<compile_context>
chip_gen: v6e
topology: v6e:2x2x1
jax: 0.10.0
libtpu: 0.0.40
codegen_flags: <defaults>
</compile_context>

<pallas_src>
import functools

import jax
import jax.numpy as jnp
from jax.experimental import pallas as pl
from jax.experimental.pallas import tpu as pltpu


def _layer_norm(x, gamma, beta, eps):
    """nn.LayerNorm over the last axis (two-pass biased variance, like torch)."""
    m = jnp.mean(x, axis=-1, keepdims=True)
    c = x - m
    var = jnp.mean(c * c, axis=-1, keepdims=True)
    return c * jax.lax.rsqrt(var + eps) * gamma + beta


def dss_encoder_kernel(z_ref, protos_t_ref, pvec_ref, w_t_ref, alphas_ref,
                       beta_ref, out_ref, *, eps, hidden_size, seq_len,
                       valid_len, num_intents):
    H, S, K = hidden_size, seq_len, num_intents
    z = z_ref[...].astype(jnp.float32)                      # (TB, S, H)
    tb = z.shape[0]
    inv_sqrt_h = 1.0 / (H ** 0.5)

    # Packed small parameters: one DMA, slice rows statically.
    pv = pvec_ref[...].astype(jnp.float32)                  # (16, H)
    ln1w, ln1b = pv[0:1, :], pv[1:2, :]
    ln3w, ln3b = pv[2:3, :], pv[3:4, :]
    ln4w, ln4b = pv[4:5, :], pv[5:6, :]
    ln5w, ln5b = pv[6:7, :], pv[7:8, :]
    w_bias = pv[8:9, :]
    b_prime = pv[9:10, :]
    alphas = alphas_ref[...].astype(jnp.float32)            # (S, H) (padded)

    # ---- _intention_clustering: softmax over the K prototypes --------------
    # Prototypes were layernorm2'ed and pre-scaled by 1/sqrt(H) in the wrapper,
    # so the matmul directly yields softmax logits (no max-shift needed, K=4).
    z_ln = _layer_norm(z, ln1w, ln1b, eps)                              # (TB,S,H)
    zf = z_ln.reshape(tb * S, H)                                        # (TB*S,H)
    logits = jnp.dot(zf, protos_t_ref[...],
                     preferred_element_type=jnp.float32)                # (TB*S,K)
    e = jnp.exp(logits)
    p_k_i = e / jnp.sum(e, axis=-1, keepdims=True)                      # (TB*S,K)

    # ---- _intention_weighting ----------------------------------------------
    kt = _layer_norm(z + alphas, ln3w, ln3b, eps)                       # (TB,S,H)
    ktf = kt.reshape(tb * S, H)
    proj = jnp.dot(ktf, w_t_ref[...],
                   preferred_element_type=jnp.float32) + w_bias
    keys = (ktf + jnp.maximum(proj, 0.0)).reshape(tb, S, H)

    q_in = (b_prime
            + alphas[valid_len - 1:valid_len, :]
            + z[:, valid_len - 1, :])                                   # (TB,H)
    # 1/sqrt(H) folded into the query (same math as scaling nums).
    query = _layer_norm(q_in, ln4w, ln4b, eps) * inv_sqrt_h             # (TB,H)
    nums = jnp.sum(keys * query[:, None, :], axis=-1)                   # (TB,S)
    if valid_len < S:                       # mask padded positions (static)
        pos = jax.lax.broadcasted_iota(jnp.int32, (1, S), 1)
        nums = jnp.where(pos < valid_len, nums, -jnp.inf)
    nums = nums - jnp.max(nums, axis=-1, keepdims=True)   # equivalent shift
    en = jnp.exp(nums)
    p_i = en / jnp.sum(en, axis=-1, keepdims=True)                      # (TB,S)

    # ---- _intention_aggr + layernorm5: one einsum, one lane-dense store ----
    attn = p_k_i.reshape(tb, S, K) * p_i[:, :, None]                    # (TB,S,K)
    agg = jnp.einsum('bsk,bsh->bkh', attn, z,
                     preferred_element_type=jnp.float32)                # (TB,K,H)
    enc = _layer_norm(beta_ref[...].astype(jnp.float32) + agg,
                      ln5w, ln5b, eps)                                  # (TB,K,H)
    out_ref[...] = enc.reshape(tb, K * H).astype(out_ref.dtype)


def _num_tensorcores():
    """Best-effort TensorCore count of the local device (v7x -> 2)."""
    try:
        dev = jax.devices()[0]
        n = getattr(dev, "num_cores", None)
        if n:
            return int(n)
        kind = str(getattr(dev, "device_kind", "")).lower()
        if "v7" in kind:
            return 2
    except Exception:
        pass
    return 1


def _vmem_budget_bytes():
    """Conservative per-step budget for live temporaries (all generations)."""
    try:
        cap = int(pltpu.get_tpu_info().vmem_capacity_bytes)
    except Exception:
        cap = 64 << 20          # v7x floor
    return min(cap // 4, 16 << 20)


def _pick_batch_tile(B, S, H, K, n_cores, budget_bytes):
    """Batch tile: single grid step on 1-TC chips when the whole batch fits
    the VMEM budget; otherwise the largest 8-aligned tile that fits, with the
    grid length rounded to a multiple of the TensorCore count (v7x)."""
    # ~12 live f32 (S,H) temporaries per batch row + (S,K)/(K,H) slabs,
    # covering the double-buffered z input block and the output block too.
    bytes_per_row = 4 * (12 * S * H + 4 * S * K + 6 * K * H)
    tb_cap = max(8, (budget_bytes // max(1, bytes_per_row)) // 8 * 8)
    if B <= 8 or (n_cores == 1 and B <= tb_cap):
        return B                       # single grid step: no pipeline overhead
    steps = max(n_cores, -(-B // tb_cap))
    steps = -(-steps // n_cores) * n_cores          # even grid on 2-TC chips
    tb = -(-B // steps)
    tb = ((tb + 7) // 8) * 8                        # 8-aligned output block
    return max(8, min(tb, tb_cap))


def dss_encoder_forward(is_input_seq, z, params, eps=1e-12, tb=None,
                        stream_dtype=None):
    B, S, H = z.shape
    K = params['protos'].shape[0]
    out_dtype = z.dtype
    beta = params['beta_input_seq'] if is_input_seq else params['beta_label_seq']

    # Hoist call-invariant prototype LayerNorm (layernorm2), transpose and the
    # 1/sqrt(H) softmax scale out of the kernel.
    p = params['protos']
    pm = jnp.mean(p, axis=-1, keepdims=True)
    pvar = jnp.mean((p - pm) ** 2, axis=-1, keepdims=True)
    protos_ln = (p - pm) * jax.lax.rsqrt(pvar + eps) * params['ln2_w'] + params['ln2_b']
    protos_scaled_t = (protos_ln * (1.0 / jnp.sqrt(jnp.float32(H)))).T     # (H,K)

    # Pack the ten (1, H) vectors into one sublane-aligned (16, H) operand.
    pvec = jnp.concatenate([params['ln1_w'], params['ln1_b'],
                            params['ln3_w'], params['ln3_b'],
                            params['ln4_w'], params['ln4_b'],
                            params['ln5_w'], params['ln5_b'],
                            params['w_bias'], params['b_prime']], axis=0)
    pvec = jnp.pad(pvec, ((0, 16 - pvec.shape[0]), (0, 0)))

    # Pad S to a multiple of 8 so the in-kernel reshapes stay tile-aligned.
    S_pad = ((S + 7) // 8) * 8
    alphas = params['alphas']
    if S_pad != S:
        z_in = jnp.pad(z, ((0, 0), (0, S_pad - S), (0, 0)))
        alphas = jnp.pad(alphas, ((0, S_pad - S), (0, 0)))
    else:
        z_in = z
    if stream_dtype is not None:        # optional bf16 stream of the big input
        z_in = z_in.astype(stream_dtype)

    n_cores = _num_tensorcores()
    if tb is None:
        tb = _pick_batch_tile(B, S_pad, H, K, n_cores, _vmem_budget_bytes())
    tb = min(tb, B)
    grid = (pl.cdiv(B, tb),)

    kernel = functools.partial(dss_encoder_kernel, eps=eps, hidden_size=H,
                               seq_len=S_pad, valid_len=S, num_intents=K)

    def _fixed(shape):
        n = len(shape)
        return pl.BlockSpec(shape, lambda b, _n=n: (0,) * _n)

    in_specs = [
        pl.BlockSpec((tb, S_pad, H), lambda b: (b, 0, 0)),   # z slab
        _fixed((H, K)),                                      # normalized+scaled protos^T
        _fixed((16, H)),                                     # packed small params
        _fixed((H, H)),                                      # W^T (in, out)
        _fixed((S_pad, H)),                                  # alphas (padded)
        _fixed((K, H)),                                      # beta_{input,label}_seq
    ]

    out_flat = pl.pallas_call(
        kernel,
        out_shape=jax.ShapeDtypeStruct((B, K * H), out_dtype),
        grid=grid,
        in_specs=in_specs,
        out_specs=pl.BlockSpec((tb, K * H), lambda b: (b, 0)),   # lane-dense slab
        compiler_params=pltpu.CompilerParams(
            dimension_semantics=("parallel",),
            vmem_limit_bytes=32 * 1024 * 1024),
    )(z_in, protos_scaled_t, pvec, params['w_t'], alphas, beta)

    return out_flat.reshape(B, K, H)    # free: (K, H) is contiguous in HBM


def dss_reference(is_input_seq, z, params, eps=1e-12):
    """Pure-JAX reference mirroring the PyTorch forward."""
    H = z.shape[-1]
    S = z.shape[1]
    hp = jax.lax.Precision.HIGHEST
    inv_sqrt_h = 1.0 / jnp.sqrt(jnp.float32(H))

    def ln(x, g, b):
        m = jnp.mean(x, axis=-1, keepdims=True)
        v = jnp.mean((x - m) ** 2, axis=-1, keepdims=True)
        return (x - m) / jnp.sqrt(v + eps) * g + b

    # clustering
    z1 = ln(z, params['ln1_w'], params['ln1_b'])
    protos_n = ln(params['protos'], params['ln2_w'], params['ln2_b'])
    logits = jnp.einsum('bsh,kh->bsk', z1, protos_n, precision=hp)
    e = jnp.exp(logits * inv_sqrt_h)
    p_k_i = e / jnp.sum(e, axis=-1, keepdims=True)

    # weighting
    kt = ln(z + params['alphas'], params['ln3_w'], params['ln3_b'])
    keys = kt + jax.nn.relu(jnp.einsum('bsh,ho->bso', kt, params['w_t'],
                                       precision=hp) + params['w_bias'])
    q = ln(params['b_prime'] + params['alphas'][S - 1:S, :] + z[:, -1, :],
           params['ln4_w'], params['ln4_b'])
    nums = jnp.einsum('bsh,bqh->bsq', keys, q[:, None, :], precision=hp) * inv_sqrt_h
    en = jnp.exp(nums)
    p_i = (en / jnp.sum(en, axis=1, keepdims=True))[..., 0]

    # aggregation
    attn = p_k_i * p_i[..., None]
    beta = params['beta_input_seq'] if is_input_seq else params['beta_label_seq']
    enc = beta + jnp.einsum('bsk,bsh->bkh', attn, z, precision=hp)
    return ln(enc, params['ln5_w'], params['ln5_b'])


def init_params(key, H, S, K):
    ks = jax.random.split(key, 10)
    inv = 1.0 / jnp.sqrt(jnp.float32(H))
    # nn.Linear(H, H): weight (out, in); kernel takes W^T = (in, out)
    w_weight = jax.random.uniform(ks[0], (H, H), jnp.float32, -inv, inv)
    return {
        'protos': jax.random.normal(ks[1], (K, H), jnp.float32) * inv,
        'beta_input_seq': jax.random.normal(ks[2], (K, H), jnp.float32) * inv,
        'beta_label_seq': jax.random.normal(ks[3], (K, H), jnp.float32) * inv,
        'w_t': w_weight.T,
        'w_bias': jax.random.uniform(ks[4], (1, H), jnp.float32, -inv, inv),
        # b_prime / alphas are zeros in __init__; use small random values to
        # exercise the full compute path (still deterministic).
        'b_prime': 0.02 * jax.random.normal(ks[5], (1, H), jnp.float32),
        'alphas': 0.02 * jax.random.normal(ks[6], (S, H), jnp.float32),
        'ln1_w': jnp.ones((1, H), jnp.float32), 'ln1_b': jnp.zeros((1, H), jnp.float32),
        'ln2_w': jnp.ones((1, H), jnp.float32), 'ln2_b': jnp.zeros((1, H), jnp.float32),
        'ln3_w': jnp.ones((1, H), jnp.float32), 'ln3_b': jnp.zeros((1, H), jnp.float32),
        'ln4_w': jnp.ones((1, H), jnp.float32), 'ln4_b': jnp.zeros((1, H), jnp.float32),
        'ln5_w': jnp.ones((1, H), jnp.float32), 'ln5_b': jnp.zeros((1, H), jnp.float32),
    }


if __name__ == "__main__":
    # batch, MAX_ITEM_LIST_LENGTH, hidden, num_intents (K*H = 128 -> lane-dense)
    B, S, H, K = 16, 8, 32, 4
    key = jax.random.PRNGKey(0)
    kz, kp = jax.random.split(key)
    z = jax.random.normal(kz, (B, S, H), jnp.float32)
    params = init_params(kp, H, S, K)

    # 1) default path (single grid step on 1-TC chips, even grid on v7x).
    out = dss_encoder_forward(True, z, params)
    jax.block_until_ready(out)
    ref = dss_reference(True, z, params)
    assert out.shape == (B, K, H), out.shape
    assert jnp.allclose(out, ref, rtol=1e-3, atol=1e-3), \
        float(jnp.max(jnp.abs(out - ref)))

    # 2) non-divisible batch (partial last block) + bf16 z stream.
    B2 = 10
    z2 = jax.random.normal(jax.random.PRNGKey(1), (B2, S, H), jnp.float32)
    out2 = dss_encoder_forward(False, z2, params, tb=8,
                               stream_dtype=jnp.bfloat16)
    jax.block_until_ready(out2)
    z2_q = z2.astype(jnp.bfloat16).astype(jnp.float32)
    ref2 = dss_reference(False, z2_q, params)
    assert out2.shape == (B2, K, H), out2.shape
    assert jnp.allclose(out2, ref2, rtol=1e-3, atol=1e-3), \
        float(jnp.max(jnp.abs(out2 - ref2)))

    # 3) non-8-aligned sequence length (wrapper pads, kernel masks).
    B3, S3 = 8, 6
    params3 = init_params(jax.random.PRNGKey(2), H, S3, K)
    z3 = jax.random.normal(jax.random.PRNGKey(3), (B3, S3, H), jnp.float32)
    out3 = dss_encoder_forward(True, z3, params3)
    jax.block_until_ready(out3)
    ref3 = dss_reference(True, z3, params3)
    assert out3.shape == (B3, K, H), out3.shape
    assert jnp.allclose(out3, ref3, rtol=1e-3, atol=1e-3), \
        float(jnp.max(jnp.abs(out3 - ref3)))

    print("KERNEL_OK")
</pallas_src>

<mosaic_0001>
module attributes {stable_mosaic.version = 11 : i64} {
  func.func @dss_encoder_kernel(%arg0: i32, %arg1: memref<16x8x32xf32, #tpu.memory_space<vmem>>, %arg2: memref<32x4xf32, #tpu.memory_space<vmem>>, %arg3: memref<16x32xf32, #tpu.memory_space<vmem>>, %arg4: memref<32x32xf32, #tpu.memory_space<vmem>>, %arg5: memref<8x32xf32, #tpu.memory_space<vmem>>, %arg6: memref<4x32xf32, #tpu.memory_space<vmem>>, %arg7: memref<16x128xf32, #tpu.memory_space<vmem>>) attributes {dimension_semantics = [#tpu.dimension_semantics<parallel>], iteration_bounds = array<i64: 1>, scalar_prefetch = 0 : i64, scratch_operands = 0 : i64, tpu.core_type = #tpu.core_type<tc>, window_params = [{transform_indices = @transform_0, window_bounds = array<i64: 16, 8, 32>}, {pipeline_mode = #tpu.pipeline_mode<synchronous>, transform_indices = @transform_1, window_bounds = array<i64: 32, 4>}, {pipeline_mode = #tpu.pipeline_mode<synchronous>, transform_indices = @transform_2, window_bounds = array<i64: 16, 32>}, {pipeline_mode = #tpu.pipeline_mode<synchronous>, transform_indices = @transform_3, window_bounds = array<i64: 32, 32>}, {pipeline_mode = #tpu.pipeline_mode<synchronous>, transform_indices = @transform_4, window_bounds = array<i64: 8, 32>}, {pipeline_mode = #tpu.pipeline_mode<synchronous>, transform_indices = @transform_5, window_bounds = array<i64: 4, 32>}, {transform_indices = @transform_6, window_bounds = array<i64: 16, 128>}]} {
    %c0 = arith.constant 0 : index
    %c0_0 = arith.constant 0 : index
    %c0_1 = arith.constant 0 : index
    %0 = vector.load %arg1[%c0, %c0_0, %c0_1] : memref<16x8x32xf32, #tpu.memory_space<vmem>>, vector<16x8x32xf32>
    %c0_2 = arith.constant 0 : index
    %c0_3 = arith.constant 0 : index
    %1 = vector.load %arg3[%c0_2, %c0_3] : memref<16x32xf32, #tpu.memory_space<vmem>>, vector<16x32xf32>
    %2 = vector.extract_strided_slice %1 {offsets = [0, 0], sizes = [1, 32], strides = [1, 1]} : vector<16x32xf32> to vector<1x32xf32>
    %3 = vector.extract_strided_slice %1 {offsets = [1, 0], sizes = [1, 32], strides = [1, 1]} : vector<16x32xf32> to vector<1x32xf32>
    %4 = vector.extract_strided_slice %1 {offsets = [2, 0], sizes = [1, 32], strides = [1, 1]} : vector<16x32xf32> to vector<1x32xf32>
    %5 = vector.extract_strided_slice %1 {offsets = [3, 0], sizes = [1, 32], strides = [1, 1]} : vector<16x32xf32> to vector<1x32xf32>
    %6 = vector.extract_strided_slice %1 {offsets = [4, 0], sizes = [1, 32], strides = [1, 1]} : vector<16x32xf32> to vector<1x32xf32>
    %7 = vector.extract_strided_slice %1 {offsets = [5, 0], sizes = [1, 32], strides = [1, 1]} : vector<16x32xf32> to vector<1x32xf32>
    %8 = vector.extract_strided_slice %1 {offsets = [6, 0], sizes = [1, 32], strides = [1, 1]} : vector<16x32xf32> to vector<1x32xf32>
    %9 = vector.extract_strided_slice %1 {offsets = [7, 0], sizes = [1, 32], strides = [1, 1]} : vector<16x32xf32> to vector<1x32xf32>
    %10 = vector.extract_strided_slice %1 {offsets = [8, 0], sizes = [1, 32], strides = [1, 1]} : vector<16x32xf32> to vector<1x32xf32>
    %11 = vector.extract_strided_slice %1 {offsets = [9, 0], sizes = [1, 32], strides = [1, 1]} : vector<16x32xf32> to vector<1x32xf32>
    %c0_4 = arith.constant 0 : index
    %c0_5 = arith.constant 0 : index
    %12 = vector.load %arg5[%c0_4, %c0_5] : memref<8x32xf32, #tpu.memory_space<vmem>>, vector<8x32xf32>
    %cst = arith.constant dense<0.000000e+00> : vector<16x8xf32>
    %13 = vector.multi_reduction <add>, %0, %cst [2] : vector<16x8x32xf32> to vector<16x8xf32>
    %14 = vector.shape_cast %13 : vector<16x8xf32> to vector<16x8x1xf32>
    %cst_6 = arith.constant 3.200000e+01 : f32
    %15 = vector.broadcast %cst_6 : f32 to vector<16x8x1xf32>
    %16 = arith.divf %14, %15 : vector<16x8x1xf32>
    %17 = vector.broadcast %16 : vector<16x8x1xf32> to vector<16x8x32xf32>
    %18 = arith.subf %0, %17 : vector<16x8x32xf32>
    %19 = arith.mulf %18, %18 : vector<16x8x32xf32>
    %cst_7 = arith.constant dense<0.000000e+00> : vector<16x8xf32>
    %20 = vector.multi_reduction <add>, %19, %cst_7 [2] : vector<16x8x32xf32> to vector<16x8xf32>
    %21 = vector.shape_cast %20 : vector<16x8xf32> to vector<16x8x1xf32>
    %cst_8 = arith.constant 3.200000e+01 : f32
    %22 = vector.broadcast %cst_8 : f32 to vector<16x8x1xf32>
    %23 = arith.divf %21, %22 : vector<16x8x1xf32>
    %cst_9 = arith.constant 9.99999996E-13 : f32
    %24 = vector.broadcast %cst_9 : f32 to vector<16x8x1xf32>
    %25 = arith.addf %23, %24 : vector<16x8x1xf32>
    %26 = math.rsqrt %25 : vector<16x8x1xf32>
    %27 = vector.broadcast %26 : vector<16x8x1xf32> to vector<16x8x32xf32>
    %28 = arith.mulf %18, %27 : vector<16x8x32xf32>
    %29 = vector.shape_cast %2 : vector<1x32xf32> to vector<1x1x32xf32>
    %30 = vector.broadcast %29 : vector<1x1x32xf32> to vector<16x8x32xf32>
    %31 = arith.mulf %28, %30 : vector<16x8x32xf32>
    %32 = vector.shape_cast %3 : vector<1x32xf32> to vector<1x1x32xf32>
    %33 = vector.broadcast %32 : vector<1x1x32xf32> to vector<16x8x32xf32>
    %34 = arith.addf %31, %33 : vector<16x8x32xf32>
    %35 = vector.shape_cast %34 : vector<16x8x32xf32> to vector<128x32xf32>
    %c0_10 = arith.constant 0 : index
    %c0_11 = arith.constant 0 : index
    %36 = vector.load %arg2[%c0_10, %c0_11] : memref<32x4xf32, #tpu.memory_space<vmem>>, vector<32x4xf32>
    %cst_12 = arith.constant dense<0.000000e+00> : vector<128x4xf32>
    %37 = tpu.matmul %35, %36, %cst_12 {dimension_numbers = #tpu.dot_dimension_numbers<[1], [0], [0], [1], [0, 0, 1, 1], [], []>} : vector<128x32xf32>, vector<32x4xf32>, vector<128x4xf32> -> vector<128x4xf32>
    %38 = math.exp %37 : vector<128x4xf32>
    %cst_13 = arith.constant dense<0.000000e+00> : vector<128xf32>
    %39 = vector.multi_reduction <add>, %38, %cst_13 [1] : vector<128x4xf32> to vector<128xf32>
    %40 = vector.shape_cast %39 : vector<128xf32> to vector<128x1xf32>
    %41 = vector.broadcast %40 : vector<128x1xf32> to vector<128x4xf32>
    %42 = arith.divf %38, %41 : vector<128x4xf32>
    %43 = vector.shape_cast %12 : vector<8x32xf32> to vector<1x8x32xf32>
    %44 = vector.broadcast %43 : vector<1x8x32xf32> to vector<16x8x32xf32>
    %45 = arith.addf %0, %44 : vector<16x8x32xf32>
    %cst_14 = arith.constant dense<0.000000e+00> : vector<16x8xf32>
    %46 = vector.multi_reduction <add>, %45, %cst_14 [2] : vector<16x8x32xf32> to vector<16x8xf32>
    %47 = vector.shape_cast %46 : vector<16x8xf32> to vector<16x8x1xf32>
    %cst_15 = arith.constant 3.200000e+01 : f32
    %48 = vector.broadcast %cst_15 : f32 to vector<16x8x1xf32>
    %49 = arith.divf %47, %48 : vector<16x8x1xf32>
    %50 = vector.broadcast %49 : vector<16x8x1xf32> to vector<16x8x32xf32>
    %51 = arith.subf %45, %50 : vector<16x8x32xf32>
    %52 = arith.mulf %51, %51 : vector<16x8x32xf32>
    %cst_16 = arith.constant dense<0.000000e+00> : vector<16x8xf32>
    %53 = vector.multi_reduction <add>, %52, %cst_16 [2] : vector<16x8x32xf32> to vector<16x8xf32>
    %54 = vector.shape_cast %53 : vector<16x8xf32> to vector<16x8x1xf32>
    %cst_17 = arith.constant 3.200000e+01 : f32
    %55 = vector.broadcast %cst_17 : f32 to vector<16x8x1xf32>
    %56 = arith.divf %54, %55 : vector<16x8x1xf32>
    %cst_18 = arith.constant 9.99999996E-13 : f32
    %57 = vector.broadcast %cst_18 : f32 to vector<16x8x1xf32>
    %58 = arith.addf %56, %57 : vector<16x8x1xf32>
    %59 = math.rsqrt %58 : vector<16x8x1xf32>
    %60 = vector.broadcast %59 : vector<16x8x1xf32> to vector<16x8x32xf32>
    %61 = arith.mulf %51, %60 : vector<16x8x32xf32>
    %62 = vector.shape_cast %4 : vector<1x32xf32> to vector<1x1x32xf32>
    %63 = vector.broadcast %62 : vector<1x1x32xf32> to vector<16x8x32xf32>
    %64 = arith.mulf %61, %63 : vector<16x8x32xf32>
    %65 = vector.shape_cast %5 : vector<1x32xf32> to vector<1x1x32xf32>
    %66 = vector.broadcast %65 : vector<1x1x32xf32> to vector<16x8x32xf32>
    %67 = arith.addf %64, %66 : vector<16x8x32xf32>
    %68 = vector.shape_cast %67 : vector<16x8x32xf32> to vector<128x32xf32>
    %c0_19 = arith.constant 0 : index
    %c0_20 = arith.constant 0 : index
    %69 = vector.load %arg4[%c0_19, %c0_20] : memref<32x32xf32, #tpu.memory_space<vmem>>, vector<32x32xf32>
    %cst_21 = arith.constant dense<0.000000e+00> : vector<128x32xf32>
    %70 = tpu.matmul %68, %69, %cst_21 {dimension_numbers = #tpu.dot_dimension_numbers<[1], [0], [0], [1], [0, 0, 1, 1], [], []>} : vector<128x32xf32>, vector<32x32xf32>, vector<128x32xf32> -> vector<128x32xf32>
    %71 = vector.broadcast %10 : vector<1x32xf32> to vector<128x32xf32>
    %72 = arith.addf %70, %71 : vector<128x32xf32>
    %cst_22 = arith.constant 0.000000e+00 : f32
    %73 = vector.broadcast %cst_22 : f32 to vector<128x32xf32>
    %74 = arith.maximumf %72, %73 : vector<128x32xf32>
    %75 = arith.addf %68, %74 : vector<128x32xf32>
    %76 = vector.shape_cast %75 : vector<128x32xf32> to vector<16x8x32xf32>
    %77 = vector.extract_strided_slice %12 {offsets = [7, 0], sizes = [1, 32], strides = [1, 1]} : vector<8x32xf32> to vector<1x32xf32>
    %78 = arith.addf %11, %77 : vector<1x32xf32>
    %79 = vector.extract_strided_slice %0 {offsets = [0, 7, 0], sizes = [16, 1, 32], strides = [1, 1, 1]} : vector<16x8x32xf32> to vector<16x1x32xf32>
    %80 = vector.shape_cast %79 : vector<16x1x32xf32> to vector<16x32xf32>
    %81 = vector.broadcast %78 : vector<1x32xf32> to vector<16x32xf32>
    %82 = arith.addf %81, %80 : vector<16x32xf32>
    %cst_23 = arith.constant dense<0.000000e+00> : vector<16xf32>
    %83 = vector.multi_reduction <add>, %82, %cst_23 [1] : vector<16x32xf32> to vector<16xf32>
    %84 = vector.shape_cast %83 : vector<16xf32> to vector<16x1xf32>
    %cst_24 = arith.constant 3.200000e+01 : f32
    %85 = vector.broadcast %cst_24 : f32 to vector<16x1xf32>
    %86 = arith.divf %84, %85 : vector<16x1xf32>
    %87 = vector.broadcast %86 : vector<16x1xf32> to vector<16x32xf32>
    %88 = arith.subf %82, %87 : vector<16x32xf32>
    %89 = arith.mulf %88, %88 : vector<16x32xf32>
    %cst_25 = arith.constant dense<0.000000e+00> : vector<16xf32>
    %90 = vector.multi_reduction <add>, %89, %cst_25 [1] : vector<16x32xf32> to vector<16xf32>
    %91 = vector.shape_cast %90 : vector<16xf32> to vector<16x1xf32>
    %cst_26 = arith.constant 3.200000e+01 : f32
    %92 = vector.broadcast %cst_26 : f32 to vector<16x1xf32>
    %93 = arith.divf %91, %92 : vector<16x1xf32>
    %cst_27 = arith.constant 9.99999996E-13 : f32
    %94 = vector.broadcast %cst_27 : f32 to vector<16x1xf32>
    %95 = arith.addf %93, %94 : vector<16x1xf32>
    %96 = math.rsqrt %95 : vector<16x1xf32>
    %97 = vector.broadcast %96 : vector<16x1xf32> to vector<16x32xf32>
    %98 = arith.mulf %88, %97 : vector<16x32xf32>
    %99 = vector.broadcast %6 : vector<1x32xf32> to vector<16x32xf32>
    %100 = arith.mulf %98, %99 : vector<16x32xf32>
    %101 = vector.broadcast %7 : vector<1x32xf32> to vector<16x32xf32>
    %102 = arith.addf %100, %101 : vector<16x32xf32>
    %cst_28 = arith.constant 0.176776692 : f32
    %103 = vector.broadcast %cst_28 : f32 to vector<16x32xf32>
    %104 = arith.mulf %102, %103 : vector<16x32xf32>
    %105 = vector.shape_cast %104 : vector<16x32xf32> to vector<16x1x32xf32>
    %106 = vector.broadcast %105 : vector<16x1x32xf32> to vector<16x8x32xf32>
    %107 = arith.mulf %76, %106 : vector<16x8x32xf32>
    %cst_29 = arith.constant dense<0.000000e+00> : vector<16x8xf32>
    %108 = vector.multi_reduction <add>, %107, %cst_29 [2] : vector<16x8x32xf32> to vector<16x8xf32>
    %cst_30 = arith.constant dense<0xFF800000> : vector<16xf32>
    %109 = vector.multi_reduction <maximumf>, %108, %cst_30 [1] : vector<16x8xf32> to vector<16xf32>
    %110 = vector.shape_cast %109 : vector<16xf32> to vector<16x1xf32>
    %111 = vector.broadcast %110 : vector<16x1xf32> to vector<16x8xf32>
    %112 = arith.subf %108, %111 : vector<16x8xf32>
    %113 = math.exp %112 : vector<16x8xf32>
    %cst_31 = arith.constant dense<0.000000e+00> : vector<16xf32>
    %114 = vector.multi_reduction <add>, %113, %cst_31 [1] : vector<16x8xf32> to vector<16xf32>
    %115 = vector.shape_cast %114 : vector<16xf32> to vector<16x1xf32>
    %116 = vector.broadcast %115 : vector<16x1xf32> to vector<16x8xf32>
    %117 = arith.divf %113, %116 : vector<16x8xf32>
    %118 = vector.shape_cast %42 : vector<128x4xf32> to vector<16x8x4xf32>
    %119 = vector.shape_cast %117 : vector<16x8xf32> to vector<16x8x1xf32>
    %120 = vector.broadcast %119 : vector<16x8x1xf32> to vector<16x8x4xf32>
    %121 = arith.mulf %118, %120 : vector<16x8x4xf32>
    "tpu.trace_start"() <{level = 10 : i32, message = "bsk,bsh->bkh"}> : () -> ()
    %cst_32 = arith.constant dense<0.000000e+00> : vector<16x4x32xf32>
    %122 = tpu.matmul %121, %0, %cst_32 {dimension_numbers = #tpu.dot_dimension_numbers<[1], [1], [2], [2], [0, 0, 0, 2, 1, 2], [0], [0]>} : vector<16x8x4xf32>, vector<16x8x32xf32>, vector<16x4x32xf32> -> vector<16x4x32xf32>
    "tpu.trace_stop"() : () -> ()
    %c0_33 = arith.constant 0 : index
    %c0_34 = arith.constant 0 : index
    %123 = vector.load %arg6[%c0_33, %c0_34] : memref<4x32xf32, #tpu.memory_space<vmem>>, vector<4x32xf32>
    %124 = vector.shape_cast %123 : vector<4x32xf32> to vector<1x4x32xf32>
    %125 = vector.broadcast %124 : vector<1x4x32xf32> to vector<16x4x32xf32>
    %126 = arith.addf %125, %122 : vector<16x4x32xf32>
    %cst_35 = arith.constant dense<0.000000e+00> : vector<16x4xf32>
    %127 = vector.multi_reduction <add>, %126, %cst_35 [2] : vector<16x4x32xf32> to vector<16x4xf32>
    %128 = vector.shape_cast %127 : vector<16x4xf32> to vector<16x4x1xf32>
    %cst_36 = arith.constant 3.200000e+01 : f32
    %129 = vector.broadcast %cst_36 : f32 to vector<16x4x1xf32>
    %130 = arith.divf %128, %129 : vector<16x4x1xf32>
    %131 = vector.broadcast %130 : vector<16x4x1xf32> to vector<16x4x32xf32>
    %132 = arith.subf %126, %131 : vector<16x4x32xf32>
    %133 = arith.mulf %132, %132 : vector<16x4x32xf32>
    %cst_37 = arith.constant dense<0.000000e+00> : vector<16x4xf32>
    %134 = vector.multi_reduction <add>, %133, %cst_37 [2] : vector<16x4x32xf32> to vector<16x4xf32>
    %135 = vector.shape_cast %134 : vector<16x4xf32> to vector<16x4x1xf32>
    %cst_38 = arith.constant 3.200000e+01 : f32
    %136 = vector.broadcast %cst_38 : f32 to vector<16x4x1xf32>
    %137 = arith.divf %135, %136 : vector<16x4x1xf32>
    %cst_39 = arith.constant 9.99999996E-13 : f32
    %138 = vector.broadcast %cst_39 : f32 to vector<16x4x1xf32>
    %139 = arith.addf %137, %138 : vector<16x4x1xf32>
    %140 = math.rsqrt %139 : vector<16x4x1xf32>
    %141 = vector.broadcast %140 : vector<16x4x1xf32> to vector<16x4x32xf32>
    %142 = arith.mulf %132, %141 : vector<16x4x32xf32>
    %143 = vector.shape_cast %8 : vector<1x32xf32> to vector<1x1x32xf32>
    %144 = vector.broadcast %143 : vector<1x1x32xf32> to vector<16x4x32xf32>
    %145 = arith.mulf %142, %144 : vector<16x4x32xf32>
    %146 = vector.shape_cast %9 : vector<1x32xf32> to vector<1x1x32xf32>
    %147 = vector.broadcast %146 : vector<1x1x32xf32> to vector<16x4x32xf32>
    %148 = arith.addf %145, %147 : vector<16x4x32xf32>
    %149 = vector.shape_cast %148 : vector<16x4x32xf32> to vector<16x128xf32>
    %c0_40 = arith.constant 0 : index
    %c0_41 = arith.constant 0 : index
    %150 = vector.load %arg7[%c0_40, %c0_41] : memref<16x128xf32, #tpu.memory_space<vmem>>, vector<16x128xf32>
    tpu.vector_store %arg7[%c0_40, %c0_41], %149 {strides = array<i32>} : memref<16x128xf32, #tpu.memory_space<vmem>>, vector<16x128xf32>,
    return
  }
  func.func @transform_0(%arg0: i32) -> (i32, i32, i32) {
    %c0_i32 = arith.constant 0 : i32
    %c0_i32_0 = arith.constant 0 : i32
    %c0_i32_1 = arith.constant 0 : i32
    return %arg0, %c0_i32, %c0_i32_0 : i32, i32, i32
  }
  func.func @transform_1(%arg0: i32) -> (i32, i32) {
    %c0_i32 = arith.constant 0 : i32
    %c0_i32_0 = arith.constant 0 : i32
    %c0_i32_1 = arith.constant 0 : i32
    return %c0_i32, %c0_i32_0 : i32, i32
  }
  func.func @transform_2(%arg0: i32) -> (i32, i32) {
    %c0_i32 = arith.constant 0 : i32
    %c0_i32_0 = arith.constant 0 : i32
    %c0_i32_1 = arith.constant 0 : i32
    return %c0_i32, %c0_i32_0 : i32, i32
  }
  func.func @transform_3(%arg0: i32) -> (i32, i32) {
    %c0_i32 = arith.constant 0 : i32
    %c0_i32_0 = arith.constant 0 : i32
    %c0_i32_1 = arith.constant 0 : i32
    return %c0_i32, %c0_i32_0 : i32, i32
  }
  func.func @transform_4(%arg0: i32) -> (i32, i32) {
    %c0_i32 = arith.constant 0 : i32
    %c0_i32_0 = arith.constant 0 : i32
    %c0_i32_1 = arith.constant 0 : i32
    return %c0_i32, %c0_i32_0 : i32, i32
  }
  func.func @transform_5(%arg0: i32) -> (i32, i32) {
    %c0_i32 = arith.constant 0 : i32
    %c0_i32_0 = arith.constant 0 : i32
    %c0_i32_1 = arith.constant 0 : i32
    return %c0_i32, %c0_i32_0 : i32, i32
  }
  func.func @transform_6(%arg0: i32) -> (i32, i32) {
    %c0_i32 = arith.constant 0 : i32
    %c0_i32_0 = arith.constant 0 : i32
    return %arg0, %c0_i32 : i32, i32
  }
}

</mosaic_0001>

<bundles_post_ra>
// kernel: tpu_custom_call.1
= control target key start
LH: loop header
LB: loop body
LE: loop exit
PB: predicated region body
PF: predicated region fallthrough
CT: control target
= control target key end

     0   :  { %11 = vsyncpa [#allocation3], 0  ;;  %s6254_s0 = inlined_call_operand.hbm [shape: f32[16,8,32], index: 0, kind: input, shape index: {}]   ;;  %s6255_s1 = inlined_call_operand.vmem [shape: f32[32,4], index: 1, kind: input, shape index: {}]   ;;  %s6256_s2 = inlined_call_operand.hbm [shape: f32[16,32], index: 2, kind: input, shape index: {}]   ;;  %s6257_s3 = inlined_call_operand.vmem [shape: f32[32,32], index: 3, kind: input, shape index: {}]   ;;  %s6258_s4 = inlined_call_operand.vmem [shape: f32[8,32], index: 4, kind: input, shape index: {}]   ;;  %s6259_s5 = inlined_call_operand.vmem [shape: f32[4,32], index: 5, kind: input, shape index: {}]   ;;  %s6260_s6 = inlined_call_operand.hbm [shape: f32[16,128], index: 6, kind: output, shape index: {}]  }
   0x1   :  { %12 = vsyncpa [#allocation6], 0 }
   0x2   :  { %13 = vsyncpa [#allocation4], 0  ;;  %s4802_s21 = smov [#allocation2]  }
   0x3   :  { %s19_s22 = sshll.u32 %s4802_s21, 4  ;;  %s20_s22 = int_to_ptr.vmem [resolvable:$true] %s19_s22 }
   0x4   :  { %s4744_s23 = scalar_lea.vmem %s20_s22, 2048  ;;  %p4749_p1 = scmp.lt.s32.totalorder %s20_s22, %s20_s22 }
   0x5   :  { %p4745_p0 = scmp.ne.s32.totalorder %s20_s22, %s4744_s23  ;;  %p4750_p2 = scmp.lt.s32.totalorder %s4744_s23, %s4744_s23 }
   0x7   :  { %p4751_p3 = por %p4750_p2, %p4749_p1 }
   0x9   :  { %p4752_p4 = pnand %p4751_p3, %p4745_p0 }
   0xb   :  { %4755 = shalt.err (!%p4752_p4)
}
   0xc   :  { %s4803_s24 = smov 128   ;;  %s4804_s25 = smov 8  }
   0xd   :  { %25 = dma.hbm_to_vmem [thread:$0]  %s6254_s0, 2048, %s20_s22, [#allocation3], %s4803_s24, %s4803_s24, %s4804_s25  }
   0xe   :  { %s4805_s28 = smov [#allocation5]  }
   0xf   :  { %s33_s29 = sshll.u32 %s4805_s28, 4  ;;  %s34_s29 = int_to_ptr.vmem [resolvable:$true] %s33_s29 }
  0x10   :  { %s4764_s30 = scalar_lea.vmem %s34_s29, 256  ;;  %p4769_p6 = scmp.lt.s32.totalorder %s34_s29, %s34_s29 }
  0x11   :  { %p4765_p5 = scmp.ne.s32.totalorder %s34_s29, %s4764_s30  ;;  %p4770_p7 = scmp.lt.s32.totalorder %s4764_s30, %s4764_s30 }
  0x13   :  { %p4771_p8 = por %p4770_p7, %p4769_p6 }
  0x15   :  { %p4772_p9 = pnand %p4771_p8, %p4765_p5 }
  0x17   :  { %4775 = shalt.err (!%p4772_p9)
}
  0x18   :  { %39 = dma.hbm_to_vmem [thread:$0]  %s6256_s2, 256, %s34_s29, [#allocation6], %s4803_s24, %s4803_s24, %s4804_s25  }
  0x19   :  { %4796 = dma.done.wait [#allocation3], 2048  }
  0x1a   :  { %4797 = vsyncadd [#allocation3], 4294965248 }
  0x1b   :  { %4798 = dma.done.wait [#allocation6], 256  }
  0x1c   :  { %4799 = vsyncadd [#allocation6], 4294967040  ;;  %v4863_v0 = vld [vmem:[#allocation2] sm:$0xff]  ;;  %vm71_vm0 = vcmask 261120   ;;  %v4870_v2 = vld [vmem:[#allocation2 + $0x10] sm:$0xff]  ;;  %vm1154_vm1 = vcmask 1041409  }
  0x1d   :  { %v4868_v1 = vld [vmem:[%s6258_s4] sm:$0xff]  ;;  %v4880_v5 = vld [vmem:[#allocation2 + $0x8] sm:$0xff]  ;;  %v4882_v6 = vld [vmem:[#allocation2 + $0x18] sm:$0xff]  ;;  %v1152_v55 = vrot.slane %v4863_v0, 7  ;;  %v1156_v63 = vrot.slane %v4870_v2, 5  ;;  %vm1157_vm2 = vcmask 1042434  }
  0x1e   :  { %v4874_v3 = vadd.f32 %v4868_v1, %v4863_v0  ;;  %v4878_v4 = vadd.f32 %v4868_v1, %v4870_v2  ;;  %v4886_v7 = vadd.f32 %v4868_v1, %v4880_v5  ;;  %v4890_v8 = vadd.f32 %v4868_v1, %v4882_v6  ;;  %v4892_v9 = vld [vmem:[#allocation2 + $0x20] sm:$0xff]  ;;  %v4894_v10 = vld [vmem:[#allocation2 + $0x28] sm:$0xff]  ;;  %v4912_v17 = vld [vmem:[#allocation2 + $0x30] sm:$0xff]  ;;  %s4813_s26 = smov 32   ;;  %s4814_s27 = smov 96  }
  0x1f   :  { %v4906_v15 = vadd.f32 %v4868_v1, %v4892_v9  ;;  %v4910_v16 = vadd.f32 %v4868_v1, %v4894_v10  ;;  %v4914_v18 = vld [vmem:[#allocation2 + $0x38] sm:$0xff]  ;;  %v4922_v21 = vadd.f32 %v4868_v1, %v4912_v17  ;;  %v4928_v23 = vld [vmem:[#allocation2 + $0x40] sm:$0xff]  ;;  %v4930_v24 = vld [vmem:[#allocation2 + $0x48] sm:$0xff]  ;;  %v1153_v56 = vrot.slane %v4880_v5, 6  ;;  %s4815_s28 = smov [#allocation7]  }
  0x20   :  { %v647_v11 = vsel %vm71_vm0, %v4874_v3, 0.0  ;;  %v653_v12 = vsel %vm71_vm0, %v4878_v4, 0.0  ;;  %v650_v13 = vsel %vm71_vm0, %v4886_v7, 0.0  ;;  %v656_v14 = vsel %vm71_vm0, %v4890_v8, 0.0  ;;  %v4944_v29 = vld [vmem:[#allocation2 + $0x50] sm:$0xff]  ;;  %v4946_v30 = vld [vmem:[#allocation2 + $0x58] sm:$0xff] }
  0x21   :  { %648 = vadd.xlane.f32.xlu0 %v647_v11  ;;  %654 = vadd.xlane.f32.xlu1 %v653_v12  ;;  %v659_v19 = vsel %vm71_vm0, %v4906_v15, 0.0  ;;  %v662_v20 = vsel %vm71_vm0, %v4910_v16, 0.0  ;;  %v4926_v22 = vadd.f32 %v4868_v1, %v4914_v18  ;;  %v665_v25 = vsel %vm71_vm0, %v4922_v21, 0.0  ;;  %v4960_v35 = vld [vmem:[#allocation2 + $0x60] sm:$0xff]  ;;  %v4962_v36 = vld [vmem:[#allocation2 + $0x68] sm:$0xff]  ;;  %v4976_v41 = vld [vmem:[#allocation2 + $0x70] sm:$0xff] }
  0x22   :  { %v4938_v27 = vadd.f32 %v4868_v1, %v4928_v23  ;;  %v4942_v28 = vadd.f32 %v4868_v1, %v4930_v24  ;;  %v4954_v33 = vadd.f32 %v4868_v1, %v4944_v29  ;;  %v4958_v34 = vadd.f32 %v4868_v1, %v4946_v30  ;;  %v4978_v42 = vld [vmem:[#allocation2 + $0x78] sm:$0xff]  ;;  %s4191_s29 = sshll.u32 %s4815_s28, 4  ;;  %s4192_s29 = int_to_ptr.vmem [resolvable:$true] %s4191_s29 }
  0x23   :  { %v668_v26 = vsel %vm71_vm0, %v4926_v22, 0.0  ;;  %v4970_v39 = vadd.f32 %v4868_v1, %v4960_v35  ;;  %v4974_v40 = vadd.f32 %v4868_v1, %v4962_v36  ;;  %v4986_v45 = vadd.f32 %v4868_v1, %v4976_v41  ;;  %s4776_s30 = scalar_lea.vmem %s4192_s29, 256  ;;  %p4781_p11 = scmp.lt.s32.totalorder %s4192_s29, %s4192_s29 }
  0x24   :  { %v671_v31 = vsel %vm71_vm0, %v4938_v27, 0.0  ;;  %v674_v32 = vsel %vm71_vm0, %v4942_v28, 0.0  ;;  %v677_v37 = vsel %vm71_vm0, %v4954_v33, 0.0  ;;  %v680_v38 = vsel %vm71_vm0, %v4958_v34, 0.0  ;;  %p4777_p10 = scmp.ne.s32.totalorder %s4192_s29, %s4776_s30  ;;  %p4782_p12 = scmp.lt.s32.totalorder %s4776_s30, %s4776_s30 }
  0x25   :  { %651 = vadd.xlane.f32.xlu0 %v650_v13  ;;  %657 = vadd.xlane.f32.xlu1 %v656_v14  ;;  %v683_v43 = vsel %vm71_vm0, %v4970_v39, 0.0  ;;  %v686_v44 = vsel %vm71_vm0, %v4974_v40, 0.0  ;;  %v4990_v46 = vadd.f32 %v4868_v1, %v4978_v42  ;;  %v689_v47 = vsel %vm71_vm0, %v4986_v45, 0.0 }
  0x26   :  { %v1174_v13 = vrot.slane %v4930_v24, 6  ;;  %vm1160_vm3 = vcmask 1043459   ;;  %vm1163_vm4 = vcmask 1044484   ;;  %vm1166_vm5 = vcmask 1045509   ;;  %p4783_p13 = por %p4782_p12, %p4781_p11 }
  0x27   :  { %v692_v48 = vsel %vm71_vm0, %v4990_v46, 0.0  ;;  %vm1169_vm6 = vcmask 1046534   ;;  %vm1171_vm7 = vcmask 1047559   ;;  %vm1573_vm8 = vcmask 64512  }
  0x28   :  { %vm550_vm9 = vcmask 31744   ;;  %vm4809_vm10 = vmmov 0   ;;  %vm3767_vm11 = vcmask 257024   ;;  %vm4178_vm12 = vcmask 523264   ;;  %p4784_p0 = pnand %p4783_p13, %p4777_p10 }
  0x29   :  { %660 = vadd.xlane.f32.xlu0 %v659_v19  ;;  %663 = vadd.xlane.f32.xlu1 %v662_v20  ;;  %vm4181_vm13 = vcmask 785408  }
  0x2d   :  { %666 = vadd.xlane.f32.xlu0 %v665_v25  ;;  %669 = vadd.xlane.f32.xlu1 %v668_v26  ;;  %v1155_v25 = vsel %vm1154_vm1, %v1153_v56, %v1152_v55  ;;  %v1178_v56 = vrot.slane %v4946_v30, 4 }
  0x31   :  { %672 = vadd.xlane.f32.xlu0 %v671_v31  ;;  %675 = vadd.xlane.f32.xlu1 %v674_v32  ;;  %v1159_v32 = vrot.slane %v4882_v6, 4 }
  0x35   :  { %678 = vadd.xlane.f32.xlu0 %v677_v37  ;;  %681 = vadd.xlane.f32.xlu1 %v680_v38  ;;  %v1176_v37 = vrot.slane %v4944_v29, 5 }
  0x39   :  { %684 = vadd.xlane.f32.xlu0 %v683_v43  ;;  %687 = vadd.xlane.f32.xlu1 %v686_v44 }
  0x3d   :  { %690 = vadd.xlane.f32.xlu0 %v689_v47  ;;  %693 = vadd.xlane.f32.xlu1 %v692_v48 }
  0xaa   :  { %v649_v49 = vpop.xlane.xlu0 %648  ;;  %v655_v50 = vpop.xlane.xlu1 %654 }
  0xab   :  { %v695_v51 = vmul.f32 0.03125, %v649_v49  ;;  %v697_v52 = vmul.f32 0.03125, %v655_v50  ;;  %v1158_v50 = vsel %vm1157_vm2, %v1156_v63, %v1155_v25  ;;  %v1129_v25 = vrot.slane %v4868_v1, 6 }
  0xad   :  { %v4997_v53 = vsub.f32 %v4874_v3, %v695_v51  ;;  %v5000_v54 = vsub.f32 %v4878_v4, %v697_v52  ;;  %v1173_v3 = vrot.slane %v4928_v23, 7 }
  0xae   :  { %v652_v57 = vpop.xlane.xlu0 %651  ;;  %v658_v58 = vpop.xlane.xlu1 %657 }
  0xaf   :  { %v696_v59 = vmul.f32 0.03125, %v652_v57  ;;  %v698_v60 = vmul.f32 0.03125, %v658_v58  ;;  %v727_v61 = vmul.f32 %v4997_v53, %v4997_v53  ;;  %v729_v62 = vmul.f32 %v5000_v54, %v5000_v54 }
  0xb0   :  { %v1175_v51 = vsel %vm1154_vm1, %v1174_v13, %v1173_v3  ;;  %v281_v57 = vlaneseq }
  0xb1   :  { %v5011_v4 = vsub.f32 %v4886_v7, %v696_v59  ;;  %v5014_v11 = vsub.f32 %v4890_v8, %v698_v60  ;;  %v743_v12 = vsel %vm71_vm0, %v727_v61, 0.0  ;;  %v749_v20 = vsel %vm71_vm0, %v729_v62, 0.0 }
  0xb2   :  { %744 = vadd.xlane.f32.xlu0 %v743_v12  ;;  %v661_v14 = vpop.xlane.xlu0 %660  ;;  %v664_v19 = vpop.xlane.xlu1 %663  ;;  %v1161_v61 = vsel %vm1160_vm3, %v1159_v32, %v1158_v50  ;;  %v1162_v12 = vrot.slane %v4892_v9, 3  ;;  %v1177_v13 = vsel %vm1157_vm2, %v1176_v37, %v1175_v51  ;;  %v5076_v51 = vld [vmem:[#allocation5 + $0x8] sm:$0xff] }
  0xb3   :  { %v699_v26 = vmul.f32 0.03125, %v661_v14  ;;  %v700_v31 = vmul.f32 0.03125, %v664_v19  ;;  %v728_v7 = vmul.f32 %v5011_v4, %v5011_v4  ;;  %v730_v8 = vmul.f32 %v5014_v11, %v5014_v11 }
  0xb4   :  { %v1179_v1 = vsel %vm1160_vm3, %v1178_v56, %v1177_v13 }
  0xb5   :  { %v5027_v38 = vsub.f32 %v4906_v15, %v699_v26  ;;  %v5030_v43 = vsub.f32 %v4910_v16, %v700_v31  ;;  %v746_v44 = vsel %vm71_vm0, %v728_v7, 0.0  ;;  %v752_v49 = vsel %vm71_vm0, %v730_v8, 0.0 }
  0xb6   :  { %750 = vadd.xlane.f32.xlu0 %v749_v20  ;;  %747 = vadd.xlane.f32.xlu1 %v746_v44  ;;  %v667_v47 = vpop.xlane.xlu0 %666  ;;  %v670_v48 = vpop.xlane.xlu1 %669  ;;  %v5057_v20 = vshrl.u32 %v281_v57, 7  ;;  %v1165_v26 = vrot.slane %v4894_v10, 2 }
  0xb7   :  { %v701_v52 = vmul.f32 0.03125, %v667_v47  ;;  %v702_v55 = vmul.f32 0.03125, %v670_v48  ;;  %v731_v15 = vmul.f32 %v5027_v38, %v5027_v38  ;;  %v732_v16 = vmul.f32 %v5030_v43, %v5030_v43 }
  0xb8   :  { %v1164_v47 = vsel %vm1163_vm4, %v1162_v12, %v1161_v61  ;;  %v1180_v48 = vrot.slane %v4960_v35, 3 }
  0xb9   :  { %v5042_v58 = vsub.f32 %v4922_v21, %v701_v52  ;;  %v5045_v59 = vsub.f32 %v4926_v22, %v702_v55  ;;  %v755_v60 = vsel %vm71_vm0, %v731_v15, 0.0  ;;  %v758_v3 = vsel %vm71_vm0, %v732_v16, 0.0 }
  0xba   :  { %753 = vadd.xlane.f32.xlu1 %v752_v49  ;;  %756 = vadd.xlane.f32.xlu0 %v755_v60  ;;  %v673_v62 = vpop.xlane.xlu0 %672  ;;  %v676_v63 = vpop.xlane.xlu1 %675  ;;  %v5079_v52 = vsub.s32 1, %v5057_v20  ;;  %v1168_v55 = vrot.slane %v4912_v17, 1  ;;  %v1167_v60 = vsel %vm1166_vm5, %v1165_v26, %v1164_v47  ;;  %v1181_v12 = vsel %vm1163_vm4, %v1180_v48, %v1179_v1 }
  0xbb   :  { %v703_v21 = vmul.f32 0.03125, %v673_v62  ;;  %v704_v14 = vmul.f32 0.03125, %v676_v63  ;;  %v733_v22 = vmul.f32 %v5042_v58, %v5042_v58  ;;  %v734_v19 = vmul.f32 %v5045_v59, %v5045_v59 }
  0xbd   :  { %v5062_v31 = vsub.f32 %v4938_v27, %v703_v21  ;;  %v5065_v7 = vsub.f32 %v4942_v28, %v704_v14  ;;  %v761_v8 = vsel %vm71_vm0, %v733_v22, 0.0  ;;  %v764_v44 = vsel %vm71_vm0, %v734_v19, 0.0 }
  0xbe   :  { %759 = vadd.xlane.f32.xlu1 %v758_v3  ;;  %762 = vadd.xlane.f32.xlu0 %v761_v8  ;;  %v679_v32 = vpop.xlane.xlu0 %678  ;;  %v682_v37 = vpop.xlane.xlu1 %681  ;;  %v1131_v3 = vadd.f32 %v1129_v25, %v5076_v51  ;;  %v1170_v22 = vsel %vm1169_vm6, %v1168_v55, %v1167_v60  ;;  %v1184_v8 = vrot.slane %v4976_v41, 1 }
  0xbf   :  { %v705_v27 = vmul.f32 0.03125, %v679_v32  ;;  %v706_v49 = vmul.f32 0.03125, %v682_v37  ;;  %v735_v28 = vmul.f32 %v5062_v31, %v5062_v31  ;;  %v736_v50 = vmul.f32 %v5065_v7, %v5065_v7 }
  0xc0   :  { %v1135_v47 = vrot.slane %v1131_v3, %v5079_v52 }
  0xc1   :  { %v5083_v15 = vsub.f32 %v4954_v33, %v705_v27  ;;  %v5086_v16 = vsub.f32 %v4958_v34, %v706_v49  ;;  %v767_v56 = vsel %vm71_vm0, %v735_v28, 0.0  ;;  %v770_v63 = vsel %vm71_vm0, %v736_v50, 0.0 }
  0xc2   :  { %765 = vadd.xlane.f32.xlu1 %v764_v44  ;;  %768 = vadd.xlane.f32.xlu0 %v767_v56  ;;  %v685_v61 = vpop.xlane.xlu0 %684  ;;  %v688_v62 = vpop.xlane.xlu1 %687  ;;  %v1182_v33 = vrot.slane %v4962_v36, 2  ;;  %v1172_v49 = vsel %vm1171_vm7, %v4914_v18, %v1170_v22  ;;  %v895_v22 = vld [vmem:[%s6257_s3] sm:$0xff] }
  0xc3   :  { %v707_v13 = vmul.f32 0.03125, %v685_v61  ;;  %v708_v21 = vmul.f32 0.03125, %v688_v62  ;;  %v737_v34 = vmul.f32 %v5083_v15, %v5083_v15  ;;  %v738_v14 = vmul.f32 %v5086_v16, %v5086_v16 }
  0xc4   :  { %v1183_v1 = vsel %vm1166_vm5, %v1182_v33, %v1181_v12 }
  0xc5   :  { %v5100_v19 = vsub.f32 %v4970_v39, %v707_v13  ;;  %v5103_v25 = vsub.f32 %v4974_v40, %v708_v21  ;;  %v773_v26 = vsel %vm71_vm0, %v737_v34, 0.0  ;;  %v776_v44 = vsel %vm71_vm0, %v738_v14, 0.0  ;;  %v898_v13 = vld [vmem:[%s6257_s3 + $0x18] sm:$0xff]  ;;  %v897_v21 = vld [vmem:[%s6257_s3 + $0x10] sm:$0xff]  ;;  %v896_v14 = vld [vmem:[%s6257_s3 + $0x8] sm:$0xff] }
  0xc6   :  { %771 = vadd.xlane.f32.xlu1 %v770_v63  ;;  %774 = vadd.xlane.f32.xlu0 %v773_v26  ;;  %v691_v32 = vpop.xlane.xlu0 %690  ;;  %v694_v37 = vpop.xlane.xlu1 %693  ;;  %v1185_v56 = vsel %vm1169_vm6, %v1184_v8, %v1183_v1  ;;  %v5129_v63 = vadd.f32 %v1172_v49, %v1135_v47 }
  0xc7   :  { %v709_v48 = vmul.f32 0.03125, %v691_v32  ;;  %v710_v39 = vmul.f32 0.03125, %v694_v37  ;;  %v739_v40 = vmul.f32 %v5100_v19, %v5100_v19  ;;  %v740_v27 = vmul.f32 %v5103_v25, %v5103_v25  ;;  %4356 = vmatprep.subr.mxu1 %v898_v13 }
  0xc8   :  { %v1191_v12 = vsel %vm71_vm0, %v5129_v63, 0.0  ;;  %4357 = vmatpush3.msra.mxu1 %v898_v13  ;;  %v5159_v13 = vsub.s32 3, %v5057_v20 }
  0xc9   :  { %v5117_v28 = vsub.f32 %v4986_v45, %v709_v48  ;;  %v5120_v50 = vsub.f32 %v4990_v46, %v710_v39  ;;  %v779_v55 = vsel %vm71_vm0, %v739_v40, 0.0  ;;  %v782_v60 = vsel %vm71_vm0, %v740_v27, 0.0  ;;  %4358 = vmatprep.subr.mxu1 %v897_v21 }
  0xca   :  { %777 = vadd.xlane.f32.xlu1 %v776_v44  ;;  %780 = vadd.xlane.f32.xlu0 %v779_v55  ;;  %v1186_v45 = vsel %vm1171_vm7, %v4978_v42, %v1185_v56 }
  0xcb   :  { %v741_v61 = vmul.f32 %v5117_v28, %v5117_v28  ;;  %v742_v62 = vmul.f32 %v5120_v50, %v5120_v50  ;;  %v5137_v33 = vadd.f32 %v1186_v45, %v1135_v47  ;;  %4359 = vmatpush3.msra.mxu1 %v897_v21  ;;  %v5154_v45 = vsub.s32 2, %v5057_v20 }
  0xcc   :  { %4360 = vmatprep.subr.mxu1 %v896_v14 }
  0xcd   :  { %v785_v46 = vsel %vm71_vm0, %v741_v61, 0.0  ;;  %v788_v3 = vsel %vm71_vm0, %v742_v62, 0.0  ;;  %v1194_v34 = vsel %vm71_vm0, %v5137_v33, 0.0  ;;  %4361 = vmatpush3.msra.mxu1 %v896_v14 }
  0xce   :  { %783 = vadd.xlane.f32.xlu1 %v782_v60  ;;  %786 = vadd.xlane.f32.xlu0 %v785_v46 }
  0xcf   :  { %4362 = vmatprep.subr.mxu1 %v895_v22 }
  0xd0   :  { %4363 = vmatpush3.msra.mxu1 %v895_v22 }
  0xd2   :  { %789 = vadd.xlane.f32.xlu1 %v788_v3  ;;  %1192 = vadd.xlane.f32.xlu0 %v1191_v12  ;;  %v5156_v12 = vld [vmem:[#allocation5] sm:$0xff] }
  0xd6   :  { %1195 = vadd.xlane.f32.xlu1 %v1194_v34 }
 0x13b   :  { %v745_v26 = vpop.xlane.xlu0 %744 }
 0x13c   :  { %v791_v8 = vmul.f32 0.03125, %v745_v26  ;;  %v5163_v26 = vrot.slane %v5156_v12, %v5154_v45 }
 0x13e   :  { %v807_v32 = vadd.f32 1e-12, %v791_v8 }
 0x13f   :  { %v748_v37 = vpop.xlane.xlu1 %747  ;;  %v751_v44 = vpop.xlane.xlu0 %750 }
 0x140   :  { %4484 = vrsqrt.f32 %v807_v32  ;;  %v792_v47 = vmul.f32 0.03125, %v748_v37  ;;  %v793_v1 = vmul.f32 0.03125, %v751_v44  ;;  %v5167_v44 = vrot.slane %v5156_v12, %v5159_v13 }
 0x142   :  { %v808_v48 = vadd.f32 1e-12, %v792_v47  ;;  %v809_v39 = vadd.f32 1e-12, %v793_v1 }
 0x143   :  { %v754_v40 = vpop.xlane.xlu1 %753  ;;  %v757_v27 = vpop.xlane.xlu0 %756 }
 0x144   :  { %4486 = vrsqrt.f32 %v808_v48  ;;  %v794_v49 = vmul.f32 0.03125, %v754_v40  ;;  %v795_v55 = vmul.f32 0.03125, %v757_v27 }
 0x145   :  { %4488 = vrsqrt.f32 %v809_v39 }
 0x146   :  { %v810_v56 = vadd.f32 1e-12, %v794_v49  ;;  %v811_v60 = vadd.f32 1e-12, %v795_v55 }
 0x147   :  { %v760_v61 = vpop.xlane.xlu1 %759  ;;  %v763_v62 = vpop.xlane.xlu0 %762 }
 0x148   :  { %4490 = vrsqrt.f32 %v810_v56  ;;  %v796_v46 = vmul.f32 0.03125, %v760_v61  ;;  %v797_v3 = vmul.f32 0.03125, %v763_v62 }
 0x149   :  { %4492 = vrsqrt.f32 %v811_v60 }
 0x14a   :  { %v812_v21 = vadd.f32 1e-12, %v796_v46  ;;  %v813_v34 = vadd.f32 1e-12, %v797_v3 }
 0x14b   :  { %v766_v14 = vpop.xlane.xlu1 %765  ;;  %v769_v22 = vpop.xlane.xlu0 %768 }
 0x14c   :  { %4494 = vrsqrt.f32 %v812_v21  ;;  %v798_v8 = vmul.f32 0.03125, %v766_v14  ;;  %v799_v32 = vmul.f32 0.03125, %v769_v22 }
 0x14d   :  { %v4485_v37 = vpop.eup %4484  ;;  %4496 = vrsqrt.f32 %v813_v34 }
 0x14e   :  { %v814_v47 = vadd.f32 1e-12, %v798_v8  ;;  %v815_v1 = vadd.f32 1e-12, %v799_v32  ;;  %v839_v48 = vmul.f32 %v4485_v37, %v4997_v53 }
 0x14f   :  { %v772_v39 = vpop.xlane.xlu1 %771  ;;  %v775_v40 = vpop.xlane.xlu0 %774 }
 0x150   :  { %4498 = vrsqrt.f32 %v814_v47  ;;  %v800_v27 = vmul.f32 0.03125, %v772_v39  ;;  %v801_v49 = vmul.f32 0.03125, %v775_v40  ;;  %v859_v55 = vmul.f32 %v5163_v26, %v839_v48 }
 0x151   :  { %v4487_v56 = vpop.eup %4486  ;;  %4500 = vrsqrt.f32 %v815_v1 }
 0x152   :  { %v4489_v60 = vpop.eup %4488  ;;  %v816_v61 = vadd.f32 1e-12, %v800_v27  ;;  %v817_v62 = vadd.f32 1e-12, %v801_v49  ;;  %v5172_v46 = vadd.f32 %v5167_v44, %v859_v55  ;;  %v840_v3 = vmul.f32 %v4487_v56, %v5011_v4 }
 0x153   :  { %v778_v21 = vpop.xlane.xlu1 %777  ;;  %v781_v34 = vpop.xlane.xlu0 %780  ;;  %v841_v53 = vmul.f32 %v4489_v60, %v5000_v54 }
 0x154   :  { %4502 = vrsqrt.f32 %v816_v61  ;;  %v802_v14 = vmul.f32 0.03125, %v778_v21  ;;  %v803_v22 = vmul.f32 0.03125, %v781_v34  ;;  %4364 = vmatprep.mubr.msk.f32.mxu1 %vm71_vm0, %v5172_v46  ;;  %v860_v8 = vmul.f32 %v5163_v26, %v840_v3 }
 0x155   :  { %v4491_v32 = vpop.eup %4490  ;;  %4504 = vrsqrt.f32 %v817_v62  ;;  %v861_v37 = vmul.f32 %v5163_v26, %v841_v53 }
 0x156   :  { %v4493_v47 = vpop.eup %4492  ;;  %v818_v1 = vadd.f32 1e-12, %v802_v14  ;;  %v819_v48 = vadd.f32 1e-12, %v803_v22  ;;  %v5181_v4 = vadd.f32 %v5167_v44, %v860_v8  ;;  %v842_v54 = vmul.f32 %v4491_v32, %v5014_v11 }
 0x157   :  { %v784_v39 = vpop.xlane.xlu1 %783  ;;  %v787_v40 = vpop.xlane.xlu0 %786  ;;  %v5185_v27 = vadd.f32 %v5167_v44, %v861_v37  ;;  %v843_v49 = vmul.f32 %v4493_v47, %v5027_v38 }
 0x158   :  { %4506 = vrsqrt.f32 %v818_v1  ;;  %v804_v55 = vmul.f32 0.03125, %v784_v39  ;;  %v805_v56 = vmul.f32 0.03125, %v787_v40  ;;  %4365 = vmatmul.mubr.msk.f32.vlgmr.msra.gmra.mxu1 %vm71_vm0, %v5181_v4  ;;  %v862_v60 = vmul.f32 %v5163_v26, %v842_v54 }
 0x159   :  { %v4495_v61 = vpop.eup %4494  ;;  %4508 = vrsqrt.f32 %v819_v48  ;;  %4367 = vmatprep.mubr.msk.f32.mxu1 %vm71_vm0, %v5185_v27  ;;  %v863_v11 = vmul.f32 %v5163_v26, %v843_v49 }
 0x15a   :  { %v4497_v62 = vpop.eup %4496  ;;  %v820_v3 = vadd.f32 1e-12, %v804_v55  ;;  %v821_v21 = vadd.f32 1e-12, %v805_v56  ;;  %v5195_v38 = vadd.f32 %v5167_v44, %v862_v60  ;;  %v844_v34 = vmul.f32 %v4495_v61, %v5030_v43 }
 0x15b   :  { %v790_v53 = vpop.xlane.xlu1 %789  ;;  %v1193_v14 = vpop.xlane.xlu0 %1192  ;;  %v5199_v22 = vadd.f32 %v5167_v44, %v863_v11  ;;  %v845_v8 = vmul.f32 %v4497_v62, %v5042_v58 }
 0x15c   :  { %4510 = vrsqrt.f32 %v820_v3  ;;  %v806_v32 = vmul.f32 0.03125, %v790_v53  ;;  %v1197_v37 = vmul.f32 0.03125, %v1193_v14  ;;  %4368 = vmatmul.mubr.msk.f32.gmra.mxu1 %vm71_vm0, %v5195_v38  ;;  %v864_v47 = vmul.f32 %v5163_v26, %v844_v34 }
 0x15d   :  { %v4499_v1 = vpop.eup %4498  ;;  %4512 = vrsqrt.f32 %v821_v21  ;;  %4370 = vmatprep.mubr.msk.f32.mxu1 %vm71_vm0, %v5199_v22  ;;  %v865_v43 = vmul.f32 %v5163_v26, %v845_v8  ;;  %v72_v8 = vsel %vm71_vm0, %v4863_v0, 0.0 }
 0x15e   :  { %v4501_v48 = vpop.eup %4500  ;;  %v822_v54 = vadd.f32 1e-12, %v806_v32  ;;  %v5209_v39 = vsub.f32 %v5129_v63, %v1197_v37  ;;  %v5212_v58 = vadd.f32 %v5167_v44, %v864_v47  ;;  %v846_v40 = vmul.f32 %v4499_v1, %v5045_v59 }
 0x15f   :  { %v1196_v49 = vpop.xlane.xlu1 %1195  ;;  %v5216_v55 = vadd.f32 %v5167_v44, %v865_v43  ;;  %v847_v56 = vmul.f32 %v4501_v48, %v5062_v31 }
 0x160   :  { %4514 = vrsqrt.f32 %v822_v54  ;;  %v1198_v60 = vmul.f32 0.03125, %v1196_v49  ;;  %4371 = vmatmul.mubr.msk.f32.gmra.mxu1 %vm71_vm0, %v5212_v58  ;;  %v1201_v63 = vmul.f32 %v5209_v39, %v5209_v39  ;;  %v866_v61 = vmul.f32 %v5163_v26, %v846_v40 }
 0x161   :  { %v4503_v11 = vpop.eup %4502  ;;  %4373 = vmatprep.mubr.msk.f32.mxu1 %vm71_vm0, %v5216_v55  ;;  %v867_v59 = vmul.f32 %v5163_v26, %v847_v56  ;;  %v75_v40 = vsel %vm71_vm0, %v4880_v5, 0.0  ;;  %v78_v56 = vsel %vm71_vm0, %v4870_v2, 0.0 }
 0x162   :  { %v4505_v62 = vpop.eup %4504  ;;  %v5228_v3 = vsub.f32 %v5137_v33, %v1198_v60  ;;  %v1203_v31 = vsel %vm71_vm0, %v1201_v63, 0.0  ;;  %v5232_v21 = vadd.f32 %v5167_v44, %v866_v61  ;;  %v848_v34 = vmul.f32 %v4503_v11, %v5065_v7 }
 0x163   :  { %1204 = vadd.xlane.f32.xlu0 %v1203_v31  ;;  %v5236_v53 = vadd.f32 %v5167_v44, %v867_v59  ;;  %v849_v14 = vmul.f32 %v4505_v62, %v5083_v15  ;;  %v81_v62 = vsel %vm71_vm0, %v4882_v6, 0.0 }
 0x164   :  { %4374 = vmatmul.mubr.msk.f32.gmra.mxu1 %vm71_vm0, %v5232_v21  ;;  %v1202_v33 = vmul.f32 %v5228_v3, %v5228_v3  ;;  %v868_v32 = vmul.f32 %v5163_v26, %v848_v34  ;;  %v84_v34 = vsel %vm71_vm0, %v4892_v9, 0.0 }
 0x165   :  { %v4507_v37 = vpop.eup %4506  ;;  %4376 = vmatprep.mubr.msk.f32.mxu1 %vm71_vm0, %v5236_v53  ;;  %v869_v7 = vmul.f32 %v5163_v26, %v849_v14 }
 0x166   :  { %v4509_v47 = vpop.eup %4508  ;;  %v1206_v15 = vsel %vm71_vm0, %v1202_v33, 0.0  ;;  %v5251_v1 = vadd.f32 %v5167_v44, %v868_v32  ;;  %v850_v43 = vmul.f32 %v4507_v37, %v5086_v16  ;;  %v87_v32 = vsel %vm71_vm0, %v4894_v10, 0.0 }
 0x167   :  { %1207 = vadd.xlane.f32.xlu1 %v1206_v15  ;;  %73 = vadd.xlane.f32.xlu0 %v72_v8  ;;  %v5255_v48 = vadd.f32 %v5167_v44, %v869_v7  ;;  %v851_v54 = vmul.f32 %v4509_v47, %v5100_v19  ;;  %v90_v7 = vsel %vm71_vm0, %v4912_v17, 0.0  ;;  %v93_v47 = vsel %vm71_vm0, %v4914_v18, 0.0 }
 0x168   :  { %4377 = vmatmul.mubr.msk.f32.gmra.mxu1 %vm71_vm0, %v5251_v1  ;;  %v870_v49 = vmul.f32 %v5163_v26, %v850_v43  ;;  %v99_v15 = vsel %vm71_vm0, %v4930_v24, 0.0  ;;  %v105_v43 = vsel %vm71_vm0, %v4946_v30, 0.0  ;;  %v117_v24 = vsel %vm71_vm0, %v4978_v42, 0.0 }
 0x169   :  { %v4511_v60 = vpop.eup %4510  ;;  %4379 = vmatprep.mubr.msk.f32.mxu1 %vm71_vm0, %v5255_v48  ;;  %v871_v16 = vmul.f32 %v5163_v26, %v851_v54  ;;  %v108_v54 = vsel %vm71_vm0, %v4960_v35, 0.0 }
 0x16a   :  { %v4513_v63 = vpop.eup %4512  ;;  %v5269_v19 = vadd.f32 %v5167_v44, %v870_v49  ;;  %v852_v61 = vmul.f32 %v4511_v60, %v5103_v25  ;;  %v111_v49 = vsel %vm71_vm0, %v4962_v36, 0.0 }
 0x16b   :  { %76 = vadd.xlane.f32.xlu1 %v75_v40  ;;  %v5273_v11 = vadd.f32 %v5167_v44, %v871_v16  ;;  %79 = vadd.xlane.f32.xlu0 %v78_v56  ;;  %v853_v59 = vmul.f32 %v4513_v63, %v5117_v28  ;;  %v114_v40 = vsel %vm71_vm0, %v4976_v41, 0.0 }
 0x16c   :  { %4380 = vmatmul.mubr.msk.f32.gmra.mxu1 %vm71_vm0, %v5269_v19  ;;  %v872_v31 = vmul.f32 %v5163_v26, %v852_v61 }
 0x16d   :  { %v4515_v14 = vpop.eup %4514  ;;  %4382 = vmatprep.mubr.msk.f32.mxu1 %vm71_vm0, %v5273_v11  ;;  %v873_v25 = vmul.f32 %v5163_v26, %v853_v59 }
 0x16e   :  { %v5287_v33 = vadd.f32 %v5167_v44, %v872_v31  ;;  %v854_v28 = vmul.f32 %v4515_v14, %v5120_v50 }
 0x16f   :  { %82 = vadd.xlane.f32.xlu1 %v81_v62  ;;  %v5291_v8 = vadd.f32 %v5167_v44, %v873_v25  ;;  %85 = vadd.xlane.f32.xlu0 %v84_v34 }
 0x170   :  { %4383 = vmatmul.mubr.msk.f32.gmra.mxu1 %vm71_vm0, %v5287_v33  ;;  %v874_v37 = vmul.f32 %v5163_v26, %v854_v28  ;;  %v96_v26 = vsel %vm71_vm0, %v4928_v23, 0.0 }
 0x171   :  { %4385 = vmatprep.mubr.msk.f32.mxu1 %vm71_vm0, %v5291_v8 }
 0x172   :  { %v5303_v50 = vadd.f32 %v5167_v44, %v874_v37  ;;  %v102_v44 = vsel %vm71_vm0, %v4944_v29, 0.0 }
 0x173   :  { %88 = vadd.xlane.f32.xlu1 %v87_v32  ;;  %91 = vadd.xlane.f32.xlu0 %v90_v7 }
 0x174   :  { %4386 = vmatmul.mubr.msk.f32.gmra.mxu1 %vm71_vm0, %v5303_v50 }
 0x177   :  { %94 = vadd.xlane.f32.xlu1 %v93_v47  ;;  %97 = vadd.xlane.f32.xlu0 %v96_v26  ;;  %v5346_v47 = vsub.s32 4, %v5057_v20 }
 0x17b   :  { %100 = vadd.xlane.f32.xlu1 %v99_v15  ;;  %103 = vadd.xlane.f32.xlu0 %v102_v44 }
 0x17f   :  { %106 = vadd.xlane.f32.xlu1 %v105_v43  ;;  %109 = vadd.xlane.f32.xlu0 %v108_v54 }
 0x183   :  { %115 = vadd.xlane.f32.xlu0 %v114_v40  ;;  %112 = vadd.xlane.f32.xlu1 %v111_v49 }
 0x187   :  { %118 = vadd.xlane.f32.xlu1 %v117_v24 }
 0x1ec   :  { %v1205_v29 = vpop.xlane.xlu0 %1204 }
 0x1ed   :  { %v1209_v56 = vmul.f32 0.03125, %v1205_v29  ;;  %v1220_v29 = vrot.slane %v5156_v12, %v5346_v47 }
 0x1ef   :  { %v1211_v30 = vadd.f32 1e-12, %v1209_v56  ;;  %v5360_v56 = vsub.s32 5, %v5057_v20 }
 0x1f0   :  { %v1208_v60 = vpop.xlane.xlu1 %1207  ;;  %v74_v16 = vpop.xlane.xlu0 %73 }
 0x1f1   :  { %4516 = vrsqrt.f32 %v1211_v30  ;;  %v121_v35 = vmul.f32 0.03125, %v74_v16  ;;  %v1210_v49 = vmul.f32 0.03125, %v1208_v60 }
 0x1f3   :  { %v5326_v63 = vsub.f32 %v4863_v0, %v121_v35 }
 0x1f4   :  { %v77_v41 = vpop.xlane.xlu1 %76  ;;  %v80_v61 = vpop.xlane.xlu0 %79 }
 0x1f5   :  { %v122_v59 = vmul.f32 0.03125, %v77_v41  ;;  %v153_v36 = vmul.f32 %v5326_v63, %v5326_v63  ;;  %v123_v62 = vmul.f32 0.03125, %v80_v61 }
 0x1f7   :  { %v5331_v42 = vsub.f32 %v4880_v5, %v122_v59  ;;  %v169_v31 = vsel %vm71_vm0, %v153_v36, 0.0  ;;  %v5335_v34 = vsub.f32 %v4870_v2, %v123_v62  ;;  %v1212_v36 = vadd.f32 1e-12, %v1210_v49 }
 0x1f8   :  { %v83_v14 = vpop.xlane.xlu1 %82  ;;  %170 = vadd.xlane.f32.xlu0 %v169_v31  ;;  %v86_v25 = vpop.xlane.xlu0 %85  ;;  %v5395_v49 = vsub.s32 0, %v5057_v20 }
 0x1f9   :  { %v124_v0 = vmul.f32 0.03125, %v83_v14  ;;  %v154_v28 = vmul.f32 %v5331_v42, %v5331_v42  ;;  %v155_v32 = vmul.f32 %v5335_v34, %v5335_v34  ;;  %v125_v37 = vmul.f32 0.03125, %v86_v25 }
 0x1fa   :  { %v1226_v14 = vrot.slane %v5156_v12, %v5360_v56  ;;  %v4806_v25 = vmov 1966171168   ;;  %4518 = vrsqrt.f32 %v1212_v36 }
 0x1fb   :  { %v5342_v7 = vsub.f32 %v4882_v6, %v124_v0  ;;  %v172_v5 = vsel %vm71_vm0, %v154_v28, 0.0  ;;  %v5349_v26 = vsub.f32 %v4892_v9, %v125_v37  ;;  %v175_v43 = vsel %vm71_vm0, %v155_v32, 0.0 }
 0x1fc   :  { %v89_v2 = vpop.xlane.xlu1 %88  ;;  %173 = vadd.xlane.f32.xlu0 %v172_v5  ;;  %v92_v15 = vpop.xlane.xlu0 %91  ;;  %v1235_v0 = vunpack.c.l.s4 %v4806_v25 }
 0x1fd   :  { %v126_v44 = vmul.f32 0.03125, %v89_v2  ;;  %v156_v54 = vmul.f32 %v5342_v7, %v5342_v7  ;;  %v127_v40 = vmul.f32 0.03125, %v92_v15  ;;  %v157_v35 = vmul.f32 %v5349_v26, %v5349_v26 }
 0x1fe   :  { %v4517_v6 = vpop.eup %4516  ;;  %v1236_v2 = vunpack.c.0.s8 %v1235_v0 }
 0x1ff   :  { %v5355_v24 = vsub.f32 %v4894_v10, %v126_v44  ;;  %v1215_v9 = vmul.f32 %v4517_v6, %v5209_v39  ;;  %v178_v16 = vsel %vm71_vm0, %v156_v54, 0.0  ;;  %v5369_v61 = vsub.f32 %v4912_v17, %v127_v40 }
 0x200   :  { %v95_v30 = vpop.xlane.xlu1 %94  ;;  %176 = vadd.xlane.f32.xlu0 %v175_v43  ;;  %v98_v41 = vpop.xlane.xlu0 %97  ;;  %v181_v17 = vsel %vm71_vm0, %v157_v35, 0.0 }
 0x201   :  { %v128_v60 = vmul.f32 0.03125, %v95_v30  ;;  %v158_v10 = vmul.f32 %v5355_v24, %v5355_v24  ;;  %v129_v59 = vmul.f32 0.03125, %v98_v41  ;;  %v1221_v31 = vmul.f32 %v1220_v29, %v1215_v9 }
 0x202   :  { %v5399_v30 = vrot.slane %v5076_v51, %v5395_v49  ;;  %v323_v51 = vld [vmem:[%s6255_s1 + $0x10] sm:$0xff] }
 0x203   :  { %v5372_v62 = vsub.f32 %v4914_v18, %v128_v60  ;;  %v184_v39 = vsel %vm71_vm0, %v158_v10, 0.0  ;;  %v5381_v32 = vsub.f32 %v4928_v23, %v129_v59  ;;  %v159_v18 = vmul.f32 %v5369_v61, %v5369_v61 }
 0x204   :  { %185 = vadd.xlane.f32.xlu1 %v184_v39  ;;  %179 = vadd.xlane.f32.xlu0 %v178_v16  ;;  %v1227_v5 = vadd.f32 %v1226_v14, %v1221_v31  ;;  %v5390_v23 = vsub.s32 %v1236_v2, %v5057_v20  ;;  %v324_v31 = vld [vmem:[%s6255_s1 + $0x18] sm:$0xff]  ;;  %v101_v0 = vpop.xlane.xlu1 %100 }
 0x205   :  { %v160_v28 = vmul.f32 %v5372_v62, %v5372_v62  ;;  %v187_v15 = vsel %vm71_vm0, %v159_v18, 0.0  ;;  %v161_v44 = vmul.f32 %v5381_v32, %v5381_v32  ;;  %4324 = vmatprep.subr.mxu0 %v324_v31 }
 0x206   :  { %v1229_v43 = vmul.f32 0.17677669, %v1227_v5  ;;  %4325 = vmatpush3.msra.mxu0 %v324_v31 }
 0x207   :  { %v190_v37 = vsel %vm71_vm0, %v160_v28, 0.0  ;;  %v193_v54 = vsel %vm71_vm0, %v161_v44, 0.0  ;;  %v4519_v6 = vpop.eup %4518  ;;  %4326 = vmatprep.subr.mxu0 %v323_v51 }
 0x208   :  { %191 = vadd.xlane.f32.xlu1 %v190_v37  ;;  %182 = vadd.xlane.f32.xlu0 %v181_v17  ;;  %v1240_v40 = vrot.slane %v1229_v43, %v5390_v23  ;;  %v1233_v16 = vcombine.high %v1229_v43, %v1229_v43  ;;  %v1216_v35 = vmul.f32 %v4519_v6, %v5228_v3  ;;  %v130_v43 = vmul.f32 0.03125, %v101_v0 }
 0x209   :  { %4327 = vmatpush3.msra.mxu0 %v323_v51 }
 0x20a   :  { %v1248_v9 = vcombine.high %v1240_v40, %v1240_v40  ;;  %v1247_v36 = vrot.slane %v1233_v16, %v5390_v23  ;;  %v1222_v39 = vmul.f32 %v1220_v29, %v1216_v35  ;;  %v1256_v17 = vrot.slane %v1240_v40, %v5390_v23  ;;  %v322_v40 = vld [vmem:[%s6255_s1 + $0x8] sm:$0xff] }
 0x20b   :  { %4328 = vmatprep.subr.mxu0 %v322_v40 }
 0x20c   :  { %188 = vadd.xlane.f32.xlu0 %v187_v15  ;;  %v1270_v60 = vrot.slane %v1248_v9, %v5390_v23  ;;  %v104_v15 = vpop.xlane.xlu0 %103  ;;  %v1228_v6 = vadd.f32 %v1226_v14, %v1222_v39  ;;  %4329 = vmatpush3.msra.mxu0 %v322_v40 }
 0x20d   :  { %v131_v39 = vmul.f32 0.03125, %v104_v15 }
 0x20e   :  { %v1280_v18 = vcombine.high %v1270_v60, %v1270_v60  ;;  %v1338_v2 = vrot.slane %v1270_v60, %v5395_v49 }
 0x210   :  { %194 = vadd.xlane.f32.xlu0 %v193_v54  ;;  %v1249_v54 = vcombine.high %v1247_v36, %v1247_v36  ;;  %v1346_v14 = vrot.slane %v1280_v18, %v5395_v49  ;;  %v1230_v18 = vmul.f32 0.17677669, %v1228_v6 }
 0x218   :  { %v4366_v41 = vpop.f32.mrf.mxu1 }
 0x219   :  { %v1023_v10 = vadd.f32 %v4366_v41, %v5399_v30 }
 0x21a   :  { %v1017_v59 = vpop.f32.mrf.mxu1 }
 0x21b   :  { %v1097_v25 = vmax.f32 %v1023_v10, 0.0  ;;  %v1018_v3 = vadd.f32 %v1017_v59, %v5399_v30  ;;  %v1334_v10 = vrot.slane %v1256_v17, %v5395_v49  ;;  %v1278_v59 = vcombine.high %v1256_v17, %v1256_v17 }
 0x21c   :  { %v4369_v28 = vpop.f32.mrf.mxu1 }
 0x21d   :  { %v1113_v29 = vadd.f32 %v1097_v25, %v5181_v4  ;;  %v1096_v37 = vmax.f32 %v1018_v3, 0.0  ;;  %v1033_v5 = vadd.f32 %v4369_v28, %v5399_v30  ;;  %v321_v4 = vld [vmem:[%s6255_s1] sm:$0xff]  ;;  %v5430_v28 = vrot.slane %v1247_v36, %v5390_v23  ;;  %v4713_v36 = vld [vmem:[#allocation2 + $0x50] sm:$0xff] }
 0x21e   :  { %v1027_v44 = vpop.f32.mrf.mxu1  ;;  %4330 = vmatprep.subr.mxu0 %v321_v4 }
 0x21f   :  { %v1112_v9 = vadd.f32 %v1096_v37, %v5172_v46  ;;  %v1099_v16 = vmax.f32 %v1033_v5, 0.0  ;;  %v1028_v35 = vadd.f32 %v1027_v44, %v5399_v30  ;;  %v1412_v41 = vmul.f32 %v1338_v2, %v1113_v29  ;;  %4331 = vmatpush3.msra.mxu0 %v321_v4  ;;  %v4712_v44 = vld [vmem:[#allocation2 + $0x48] sm:$0xff] }
 0x220   :  { %v4372_v60 = vpop.f32.mrf.mxu1  ;;  %v1277_v29 = vrot.slane %v1249_v54, %v5390_v23  ;;  %v5436_v40 = vsub.f32 %v4712_v44, %v130_v43  ;;  %v1350_v43 = vrot.slane %v5430_v28, %v5395_v49 }
 0x221   :  { %v1115_v31 = vadd.f32 %v1099_v16, %v5195_v38  ;;  %v1098_v51 = vmax.f32 %v1028_v35, 0.0  ;;  %v1043_v25 = vadd.f32 %v4372_v60, %v5399_v30  ;;  %v1430_v46 = vsel %vm71_vm0, %v1412_v41, 0.0 }
 0x222   :  { %v1037_v3 = vpop.f32.mrf.mxu1  ;;  %1431 = vadd.xlane.f32.xlu1 %v1430_v46  ;;  %v1411_v0 = vmul.f32 %v1334_v10, %v1112_v9  ;;  %v1342_v9 = vrot.slane %v1278_v59, %v5395_v49  ;;  %v5439_v16 = vsub.f32 %v4713_v36, %v131_v39  ;;  %v1354_v60 = vrot.slane %v1277_v29, %v5395_v49 }
 0x223   :  { %v1114_v17 = vadd.f32 %v1098_v51, %v5185_v27  ;;  %v1101_v37 = vmax.f32 %v1043_v25, 0.0  ;;  %v1038_v38 = vadd.f32 %v1037_v3, %v5399_v30  ;;  %v1414_v5 = vmul.f32 %v1346_v14, %v1115_v31 }
 0x224   :  { %v4375_v2 = vpop.f32.mrf.mxu1  ;;  %v1427_v15 = vsel %vm71_vm0, %v1411_v0, 0.0  ;;  %v1289_v10 = vrot.slane %v1230_v18, %v5390_v23  ;;  %v1281_v39 = vcombine.high %v1277_v29, %v1277_v29  ;;  %v162_v46 = vmul.f32 %v5436_v40, %v5436_v40 }
 0x225   :  { %v1117_v54 = vadd.f32 %v1101_v37, %v5212_v58  ;;  %v1100_v6 = vmax.f32 %v1038_v38, 0.0  ;;  %v1053_v27 = vadd.f32 %v4375_v2, %v5399_v30  ;;  %1428 = vadd.xlane.f32.xlu0 %v1427_v15  ;;  %v1436_v4 = vsel %vm71_vm0, %v1414_v5, 0.0 }
 0x226   :  { %v1047_v35 = vpop.f32.mrf.mxu1  ;;  %1437 = vadd.xlane.f32.xlu1 %v1436_v4  ;;  %v1413_v41 = vmul.f32 %v1342_v9, %v1114_v17  ;;  %v1297_v5 = vcombine.high %v1289_v10, %v1289_v10  ;;  %v1282_v29 = vcombine.high %v1230_v18, %v1230_v18  ;;  %v1362_v44 = vrot.slane %v1281_v39, %v5395_v49  ;;  %v110_v39 = vpop.xlane.xlu0 %109 }
 0x227   :  { %v1116_v14 = vadd.f32 %v1100_v6, %v5199_v22  ;;  %v1103_v59 = vmax.f32 %v1053_v27, 0.0  ;;  %v1048_v58 = vadd.f32 %v1047_v35, %v5399_v30  ;;  %v1416_v25 = vmul.f32 %v1354_v60, %v1117_v54 }
 0x228   :  { %v4378_v31 = vpop.f32.mrf.mxu1  ;;  %v1433_v51 = vsel %vm71_vm0, %v1413_v41, 0.0  ;;  %v163_v22 = vmul.f32 %v5439_v16, %v5439_v16  ;;  %v196_v6 = vsel %vm71_vm0, %v162_v46, 0.0  ;;  %v5465_v27 = vrot.slane %v1289_v10, %v5390_v23 }
 0x229   :  { %v1119_v3 = vadd.f32 %v1103_v59, %v5232_v21  ;;  %v1102_v0 = vmax.f32 %v1048_v58, 0.0  ;;  %v1063_v17 = vadd.f32 %v4378_v31, %v5399_v30  ;;  %v1415_v37 = vmul.f32 %v1350_v43, %v1116_v14  ;;  %v107_v43 = vpop.xlane.xlu1 %106 }
 0x22a   :  { %v1057_v38 = vpop.f32.mrf.mxu1  ;;  %1434 = vadd.xlane.f32.xlu1 %v1433_v51  ;;  %v1279_v21 = vcombine.high %v5430_v28, %v5430_v28  ;;  %v1442_v54 = vsel %vm71_vm0, %v1416_v25, 0.0  ;;  %v1319_v28 = vrot.slane %v1297_v5, %v5390_v23  ;;  %v1296_v58 = vrot.slane %v1282_v29, %v5390_v23 }
 0x22b   :  { %v1058_v2 = vadd.f32 %v1057_v38, %v5399_v30  ;;  %v1439_v15 = vsel %vm71_vm0, %v1415_v37, 0.0  ;;  %v1105_v9 = vmax.f32 %v1063_v17, 0.0  ;;  %v1118_v18 = vadd.f32 %v1102_v0, %v5216_v55 }
 0x22c   :  { %v4381_v36 = vpop.f32.mrf.mxu1  ;;  %1440 = vadd.xlane.f32.xlu0 %v1439_v15  ;;  %v1418_v41 = vmul.f32 %v1362_v44, %v1119_v3  ;;  %v1358_v59 = vrot.slane %v1279_v21, %v5395_v49  ;;  %v199_v55 = vsel %vm71_vm0, %v163_v22, 0.0  ;;  %v132_v51 = vmul.f32 0.03125, %v107_v43  ;;  %v4714_v44 = vld [vmem:[#allocation2 + $0x58] sm:$0xff] }
 0x22d   :  { %v1104_v4 = vmax.f32 %v1058_v2, 0.0  ;;  %v1073_v35 = vadd.f32 %v4381_v36, %v5399_v30  ;;  %v1121_v10 = vadd.f32 %v1105_v9, %v5251_v1  ;;  %v1366_v25 = vrot.slane %v5465_v27, %v5395_v49 }
 0x22e   :  { %v1067_v60 = vpop.f32.mrf.mxu1  ;;  %1443 = vadd.xlane.f32.xlu1 %v1442_v54  ;;  %v1417_v0 = vmul.f32 %v1358_v59, %v1118_v18  ;;  %v1370_v37 = vrot.slane %v1319_v28, %v5395_v49  ;;  %v133_v38 = vmul.f32 0.03125, %v110_v39  ;;  %v1312_v22 = vrot.slane %v1296_v58, %v5390_v23 }
 0x22f   :  { %v1120_v14 = vadd.f32 %v1104_v4, %v5236_v53  ;;  %v1107_v46 = vmax.f32 %v1073_v35, 0.0  ;;  %v1068_v3 = vadd.f32 %v1067_v60, %v5399_v30  ;;  %v1448_v53 = vsel %vm71_vm0, %v1418_v41, 0.0  ;;  %v116_v4 = vpop.xlane.xlu0 %115  ;;  %v4715_v41 = vld [vmem:[#allocation2 + $0x60] sm:$0xff] }
 0x230   :  { %v4384_v31 = vpop.f32.mrf.mxu1  ;;  %197 = vadd.xlane.f32.xlu0 %v196_v6  ;;  %v1329_v29 = vcombine.high %v1319_v28, %v1319_v28  ;;  %v5483_v21 = vsub.f32 %v4714_v44, %v132_v51  ;;  %v1420_v9 = vmul.f32 %v1370_v37, %v1121_v10  ;;  %v1445_v18 = vsel %vm71_vm0, %v1417_v0, 0.0  ;;  %v4716_v37 = vld [vmem:[#allocation2 + $0x70] sm:$0xff]  ;;  %v113_v44 = vpop.xlane.xlu1 %112 }
 0x231   :  { %v1419_v5 = vmul.f32 %v1366_v25, %v1120_v14  ;;  %v1083_v2 = vadd.f32 %v4384_v31, %v5399_v30  ;;  %v1123_v36 = vadd.f32 %v1107_v46, %v5269_v19  ;;  %v1106_v54 = vmax.f32 %v1068_v3, 0.0 }
 0x232   :  { %v1077_v17 = vpop.f32.mrf.mxu1  ;;  %1449 = vadd.xlane.f32.xlu1 %v1448_v53  ;;  %v5487_v43 = vsub.f32 %v4715_v41, %v133_v38  ;;  %v1327_v60 = vcombine.high %v5465_v27, %v5465_v27  ;;  %v1298_v28 = vcombine.high %v1296_v58, %v1296_v58  ;;  %v1382_v19 = vrot.slane %v1312_v22, %v5395_v49 }
 0x233   :  { %v1078_v1 = vadd.f32 %v1077_v17, %v5399_v30  ;;  %v1451_v59 = vsel %vm71_vm0, %v1419_v5, 0.0  ;;  %v1378_v39 = vrot.slane %v1329_v29, %v5395_v49  ;;  %v1109_v10 = vmax.f32 %v1083_v2, 0.0 }
 0x234   :  { %v4387_v15 = vpop.f32.mrf.mxu1  ;;  %200 = vadd.xlane.f32.xlu0 %v199_v55  ;;  %v1454_v31 = vsel %vm71_vm0, %v1420_v9, 0.0  ;;  %v164_v55 = vmul.f32 %v5483_v21, %v5483_v21  ;;  %v135_v51 = vmul.f32 0.03125, %v116_v4  ;;  %v1122_v25 = vadd.f32 %v1106_v54, %v5255_v48  ;;  %v119_v41 = vpop.xlane.xlu1 %118 }
 0x235   :  { %v1108_v6 = vmax.f32 %v1078_v1, 0.0  ;;  %v1374_v3 = vrot.slane %v1327_v60, %v5395_v49  ;;  %v1326_v53 = vrot.slane %v1298_v28, %v5390_v23  ;;  %v1125_v0 = vadd.f32 %v1109_v10, %v5287_v33 }
 0x236   :  { %v1087_v35 = vpop.f32.mrf.mxu1  ;;  %1446 = vadd.xlane.f32.xlu1 %v1445_v18  ;;  %v202_v17 = vsel %vm71_vm0, %v164_v55, 0.0  ;;  %v5505_v38 = vsub.f32 %v4716_v37, %v135_v51  ;;  %v165_v48 = vmul.f32 %v5487_v43, %v5487_v43  ;;  %v1093_v1 = vadd.f32 %v4387_v15, %v5399_v30  ;;  %v4718_v55 = vld [vmem:[#allocation2 + $0x78] sm:$0xff] }
 0x237   :  { %v1124_v14 = vadd.f32 %v1108_v6, %v5273_v11  ;;  %v1088_v27 = vadd.f32 %v1087_v35, %v5399_v30  ;;  %v1422_v11 = vmul.f32 %v1378_v39, %v1123_v36  ;;  %v1421_v2 = vmul.f32 %v1374_v3, %v1122_v25 }
 0x238   :  { %1452 = vadd.xlane.f32.xlu0 %v1451_v59  ;;  %v1386_v23 = vrot.slane %v1326_v53, %v5395_v49  ;;  %v1328_v33 = vcombine.high %v1312_v22, %v1312_v22  ;;  %v205_v9 = vsel %vm71_vm0, %v165_v48, 0.0  ;;  %v167_v36 = vmul.f32 %v5505_v38, %v5505_v38  ;;  %v4717_v59 = vld [vmem:[#allocation2 + $0x68] sm:$0xff] }
 0x239   :  { %v1423_v58 = vmul.f32 %v1382_v19, %v1124_v14  ;;  %v1110_v5 = vmax.f32 %v1088_v27, 0.0  ;;  %v1460_v29 = vsel %vm71_vm0, %v1422_v11, 0.0  ;;  %v1111_v54 = vmax.f32 %v1093_v1, 0.0 }
 0x23a   :  { %1455 = vadd.xlane.f32.xlu1 %v1454_v31  ;;  %v1457_v30 = vsel %vm71_vm0, %v1421_v2, 0.0  ;;  %v1424_v15 = vmul.f32 %v1386_v23, %v1125_v0  ;;  %v134_v18 = vmul.f32 0.03125, %v113_v44  ;;  %v1390_v4 = vrot.slane %v1328_v33, %v5395_v49 }
 0x23b   :  { %v1463_v46 = vsel %vm71_vm0, %v1423_v58, 0.0  ;;  %v1126_v6 = vadd.f32 %v1110_v5, %v5291_v8  ;;  %v1330_v35 = vcombine.high %v1326_v53, %v1326_v53  ;;  %v1127_v22 = vadd.f32 %v1111_v54, %v5303_v50 }
 0x23c   :  { %1464 = vadd.xlane.f32.xlu0 %v1463_v46  ;;  %v1466_v60 = vsel %vm71_vm0, %v1424_v15, 0.0  ;;  %v211_v28 = vsel %vm71_vm0, %v167_v36, 0.0  ;;  %v5521_v8 = vsub.f32 %v4717_v59, %v134_v18  ;;  %v136_v19 = vmul.f32 0.03125, %v119_v41 }
 0x23d   :  { %v1425_v14 = vmul.f32 %v1390_v4, %v1126_v6  ;;  %v1394_v39 = vrot.slane %v1330_v35, %v5395_v49  ;;  %v5536_v6 = vrot.slane %v5156_v12, %v5395_v49  ;;  %v5540_v4 = vrot.slane %v5156_v12, %v5079_v52 }
 0x23e   :  { %1461 = vadd.xlane.f32.xlu1 %v1460_v29  ;;  %v5525_v51 = vsub.f32 %v4718_v55, %v136_v19  ;;  %v166_v50 = vmul.f32 %v5521_v8, %v5521_v8 }
 0x23f   :  { %v1469_v10 = vsel %vm71_vm0, %v1425_v14, 0.0  ;;  %v1426_v31 = vmul.f32 %v1394_v39, %v1127_v22 }
 0x240   :  { %203 = vadd.xlane.f32.xlu0 %v202_v17  ;;  %v208_v27 = vsel %vm71_vm0, %v166_v50, 0.0  ;;  %v168_v58 = vmul.f32 %v5525_v51, %v5525_v51 }
 0x241   :  { %v1472_v25 = vsel %vm71_vm0, %v1426_v31, 0.0 }
 0x242   :  { %1458 = vadd.xlane.f32.xlu1 %v1457_v30  ;;  %v214_v11 = vsel %vm71_vm0, %v168_v58, 0.0 }
 0x244   :  { %206 = vadd.xlane.f32.xlu0 %v205_v9 }
 0x246   :  { %1467 = vadd.xlane.f32.xlu1 %v1466_v60 }
 0x248   :  { %212 = vadd.xlane.f32.xlu0 %v211_v28 }
 0x24a   :  { %1470 = vadd.xlane.f32.xlu1 %v1469_v10 }
 0x24e   :  { %1473 = vadd.xlane.f32.xlu1 %v1472_v25 }
 0x252   :  { %209 = vadd.xlane.f32.xlu1 %v208_v27 }
 0x256   :  { %215 = vadd.xlane.f32.xlu1 %v214_v11 }
 0x281   :  { %v171_v46 = vpop.xlane.xlu0 %170 }
 0x282   :  { %v217_v3 = vmul.f32 0.03125, %v171_v46 }
 0x284   :  { %v233_v53 = vadd.f32 1e-12, %v217_v3 }
 0x285   :  { %v174_v0 = vpop.xlane.xlu0 %173 }
 0x286   :  { %4520 = vrsqrt.f32 %v233_v53  ;;  %v218_v17 = vmul.f32 0.03125, %v174_v0 }
 0x288   :  { %v234_v37 = vadd.f32 1e-12, %v218_v17 }
 0x289   :  { %v177_v48 = vpop.xlane.xlu0 %176 }
 0x28a   :  { %4522 = vrsqrt.f32 %v234_v37  ;;  %v219_v1 = vmul.f32 0.03125, %v177_v48 }
 0x28c   :  { %v235_v5 = vadd.f32 1e-12, %v219_v1 }
 0x28d   :  { %v186_v29 = vpop.xlane.xlu1 %185  ;;  %v180_v2 = vpop.xlane.xlu0 %179 }
 0x28e   :  { %4524 = vrsqrt.f32 %v235_v5  ;;  %v222_v44 = vmul.f32 0.03125, %v186_v29  ;;  %v220_v23 = vmul.f32 0.03125, %v180_v2 }
 0x290   :  { %v238_v33 = vadd.f32 1e-12, %v222_v44  ;;  %v236_v9 = vadd.f32 1e-12, %v220_v23 }
 0x291   :  { %v192_v36 = vpop.xlane.xlu1 %191  ;;  %v183_v54 = vpop.xlane.xlu0 %182 }
 0x292   :  { %4526 = vrsqrt.f32 %v238_v33  ;;  %v224_v30 = vmul.f32 0.03125, %v192_v36  ;;  %v221_v15 = vmul.f32 0.03125, %v183_v54 }
 0x293   :  { %v4521_v18 = vpop.eup %4520  ;;  %4528 = vrsqrt.f32 %v236_v9 }
 0x294   :  { %v240_v35 = vadd.f32 1e-12, %v224_v30  ;;  %v237_v41 = vadd.f32 1e-12, %v221_v15  ;;  %v265_v22 = vmul.f32 %v4521_v18, %v5326_v63 }
 0x295   :  { %v189_v60 = vpop.xlane.xlu0 %188 }
 0x296   :  { %4530 = vrsqrt.f32 %v240_v35  ;;  %v223_v28 = vmul.f32 0.03125, %v189_v60  ;;  %v285_v14 = vmul.f32 %v5536_v6, %v265_v22 }
 0x297   :  { %v4523_v59 = vpop.eup %4522  ;;  %4532 = vrsqrt.f32 %v237_v41 }
 0x298   :  { %v239_v19 = vadd.f32 1e-12, %v223_v28  ;;  %v305_v39 = vadd.f32 %v5540_v4, %v285_v14  ;;  %v266_v10 = vmul.f32 %v4523_v59, %v5331_v42 }
 0x299   :  { %v195_v31 = vpop.xlane.xlu0 %194 }
 0x29a   :  { %4534 = vrsqrt.f32 %v239_v19  ;;  %v225_v12 = vmul.f32 0.03125, %v195_v31  ;;  %4332 = vmatprep.mubr.msk.f32.mxu0 %vm71_vm0, %v305_v39  ;;  %v286_v55 = vmul.f32 %v5536_v6, %v266_v10 }
 0x29b   :  { %v4525_v63 = vpop.eup %4524 }
 0x29c   :  { %v241_v50 = vadd.f32 1e-12, %v225_v12  ;;  %v306_v25 = vadd.f32 %v5540_v4, %v286_v55  ;;  %v267_v27 = vmul.f32 %v4525_v63, %v5335_v34 }
 0x29e   :  { %4536 = vrsqrt.f32 %v241_v50  ;;  %4333 = vmatmul.mubr.msk.f32.vlgmr.msra.gmra.mxu0 %vm71_vm0, %v306_v25  ;;  %v287_v58 = vmul.f32 %v5536_v6, %v267_v27 }
 0x29f   :  { %v4527_v11 = vpop.eup %4526 }
 0x2a0   :  { %v4529_v42 = vpop.eup %4528  ;;  %v307_v46 = vadd.f32 %v5540_v4, %v287_v58  ;;  %v270_v53 = vmul.f32 %v4527_v11, %v5355_v24 }
 0x2a1   :  { %v268_v3 = vmul.f32 %v4529_v42, %v5342_v7 }
 0x2a2   :  { %4335 = vmatprep.mubr.msk.f32.mxu0 %vm71_vm0, %v307_v46  ;;  %v290_v1 = vmul.f32 %v5536_v6, %v270_v53 }
 0x2a3   :  { %v4531_v0 = vpop.eup %4530  ;;  %v288_v17 = vmul.f32 %v5536_v6, %v268_v3 }
 0x2a4   :  { %v4533_v37 = vpop.eup %4532  ;;  %v272_v5 = vmul.f32 %v4531_v0, %v5372_v62  ;;  %v310_v44 = vadd.f32 %v5540_v4, %v290_v1 }
 0x2a5   :  { %v308_v34 = vadd.f32 %v5540_v4, %v288_v17  ;;  %v269_v48 = vmul.f32 %v4533_v37, %v5349_v26 }
 0x2a6   :  { %v292_v33 = vmul.f32 %v5536_v6, %v272_v5 }
 0x2a7   :  { %v4535_v29 = vpop.eup %4534  ;;  %4336 = vmatmul.mubr.msk.f32.gmra.mxu0 %vm71_vm0, %v308_v34  ;;  %v289_v7 = vmul.f32 %v5536_v6, %v269_v48 }
 0x2a8   :  { %v271_v2 = vmul.f32 %v4535_v29, %v5369_v61  ;;  %v1492_v61 = vand.u32 127, %v281_v57  ;;  %v312_v54 = vadd.f32 %v5540_v4, %v292_v33 }
 0x2a9   :  { %v309_v24 = vadd.f32 %v5540_v4, %v289_v7 }
 0x2aa   :  { %v291_v23 = vmul.f32 %v5536_v6, %v271_v2  ;;  %v5585_v41 = vsub.s32 %v1492_v61, %v5057_v20 }
 0x2ab   :  { %v4537_v26 = vpop.eup %4536  ;;  %4338 = vmatprep.mubr.msk.f32.mxu0 %vm71_vm0, %v309_v24  ;;  %v5569_v9 = vpop.xlane.xlu1 %1431 }
 0x2ac   :  { %4339 = vmatmul.mubr.msk.f32.gmra.mxu0 %vm71_vm0, %v310_v44  ;;  %v311_v62 = vadd.f32 %v5540_v4, %v291_v23  ;;  %v273_v36 = vmul.f32 %v4537_v26, %v5381_v32  ;;  %v1500_v60 = vrot.slane %v5569_v9, %v5585_v41 }
 0x2ae   :  { %4341 = vmatprep.mubr.msk.f32.mxu0 %vm71_vm0, %v311_v62  ;;  %v293_v30 = vmul.f32 %v5536_v6, %v273_v36  ;;  %v5580_v18 = vpop.xlane.xlu0 %1428 }
 0x2af   :  { %v5578_v15 = vpop.xlane.xlu1 %1437  ;;  %v1496_v57 = vrot.slane %v5580_v18, %v5585_v41 }
 0x2b0   :  { %4342 = vmatmul.mubr.msk.f32.gmra.mxu0 %vm71_vm0, %v312_v54  ;;  %v313_v35 = vadd.f32 %v5540_v4, %v293_v30  ;;  %v1508_v39 = vrot.slane %v5578_v15, %v5585_v41 }
 0x2b1   :  { %v1557_v14 = vsel %vm1154_vm1, %v1500_v60, %v1496_v57 }
 0x2b2   :  { %4344 = vmatprep.mubr.msk.f32.mxu0 %vm71_vm0, %v313_v35 }
 0x2b3   :  { %v5590_v32 = vpop.xlane.xlu1 %1434 }
 0x2b4   :  { %v1504_v22 = vrot.slane %v5590_v32, %v5585_v41 }
 0x2b5   :  { %v5596_v28 = vpop.xlane.xlu0 %1440 }
 0x2b6   :  { %v1558_v19 = vsel %vm1157_vm2, %v1504_v22, %v1557_v14  ;;  %v1512_v31 = vrot.slane %v5596_v28, %v5585_v41 }
 0x2b7   :  { %v5599_v59 = vpop.xlane.xlu1 %1443  ;;  %v1559_v55 = vsel %vm1160_vm3, %v1508_v39, %v1558_v19 }
 0x2b8   :  { %v1516_v25 = vrot.slane %v5599_v59, %v5585_v41  ;;  %v1560_v58 = vsel %vm1163_vm4, %v1512_v31, %v1559_v55 }
 0x2b9   :  { %v198_v10 = vpop.xlane.xlu0 %197 }
 0x2ba   :  { %v226_v12 = vmul.f32 0.03125, %v198_v10  ;;  %v1561_v17 = vsel %vm1166_vm5, %v1516_v25, %v1560_v58 }
 0x2bb   :  { %v5607_v63 = vpop.xlane.xlu1 %1449 }
 0x2bc   :  { %v242_v50 = vadd.f32 1e-12, %v226_v12  ;;  %v1524_v53 = vrot.slane %v5607_v63, %v5585_v41 }
 0x2bd   :  { %v201_v27 = vpop.xlane.xlu0 %200 }
 0x2be   :  { %4538 = vrsqrt.f32 %v242_v50  ;;  %v227_v11 = vmul.f32 0.03125, %v201_v27 }
 0x2bf   :  { %v5612_v42 = vpop.xlane.xlu1 %1446 }
 0x2c0   :  { %v243_v46 = vadd.f32 1e-12, %v227_v11  ;;  %v1520_v3 = vrot.slane %v5612_v42, %v5585_v41 }
 0x2c1   :  { %v5618_v0 = vpop.xlane.xlu0 %1452 }
 0x2c2   :  { %4540 = vrsqrt.f32 %v243_v46  ;;  %v1562_v37 = vsel %vm1169_vm6, %v1520_v3, %v1561_v17  ;;  %v1528_v33 = vrot.slane %v5618_v0, %v5585_v41 }
 0x2c3   :  { %v5622_v34 = vpop.xlane.xlu1 %1455  ;;  %v1563_v48 = vsel %vm1171_vm7, %v1524_v53, %v1562_v37 }
 0x2c4   :  { %v1574_v1 = vsel %vm1573_vm8, %v1563_v48, -inf  ;;  %v1532_v2 = vrot.slane %v5622_v34, %v5585_v41 }
 0x2c5   :  { %1575 = vmax.xlane.f32.xlu0 %v1574_v1  ;;  %v5626_v5 = vpop.xlane.xlu0 %1464 }
 0x2c6   :  { %v1564_v54 = vsel %vm1154_vm1, %v1532_v2, %v1528_v33  ;;  %v1544_v55 = vrot.slane %v5626_v5, %v5585_v41 }
 0x2c7   :  { %v5628_v29 = vpop.xlane.xlu1 %1461 }
 0x2c8   :  { %v1540_v14 = vrot.slane %v5628_v29, %v5585_v41 }
 0x2c9   :  { %v204_v7 = vpop.xlane.xlu0 %203 }
 0x2ca   :  { %v228_v24 = vmul.f32 0.03125, %v204_v7 }
 0x2cb   :  { %v4539_v44 = vpop.eup %4538  ;;  %v5632_v23 = vpop.xlane.xlu1 %1458 }
 0x2cc   :  { %v244_v26 = vadd.f32 1e-12, %v228_v24  ;;  %v1536_v62 = vrot.slane %v5632_v23, %v5585_v41  ;;  %v274_v36 = vmul.f32 %v4539_v44, %v5436_v40 }
 0x2cd   :  { %v207_v61 = vpop.xlane.xlu0 %206 }
 0x2ce   :  { %4542 = vrsqrt.f32 %v244_v26  ;;  %v229_v30 = vmul.f32 0.03125, %v207_v61  ;;  %v294_v35 = vmul.f32 %v5536_v6, %v274_v36  ;;  %v1565_v22 = vsel %vm1157_vm2, %v1536_v62, %v1564_v54 }
 0x2cf   :  { %v4541_v57 = vpop.eup %4540  ;;  %v5642_v60 = vpop.xlane.xlu1 %1467  ;;  %v1566_v31 = vsel %vm1160_vm3, %v1540_v14, %v1565_v22 }
 0x2d0   :  { %v245_v19 = vadd.f32 1e-12, %v229_v30  ;;  %v314_v39 = vadd.f32 %v5540_v4, %v294_v35  ;;  %v275_v40 = vmul.f32 %v4541_v57, %v5439_v16  ;;  %v1548_v27 = vrot.slane %v5642_v60, %v5585_v41 }
 0x2d1   :  { %v213_v10 = vpop.xlane.xlu0 %212  ;;  %v1567_v11 = vsel %vm1163_vm4, %v1544_v55, %v1566_v31 }
 0x2d2   :  { %4544 = vrsqrt.f32 %v245_v19  ;;  %4345 = vmatmul.mubr.msk.f32.gmra.mxu0 %vm71_vm0, %v314_v39  ;;  %v295_v12 = vmul.f32 %v5536_v6, %v275_v40  ;;  %v231_v50 = vmul.f32 0.03125, %v213_v10  ;;  %v1568_v17 = vsel %vm1166_vm5, %v1548_v27, %v1567_v11 }
 0x2d3   :  { %v5653_v25 = vpop.xlane.xlu1 %1470 }
 0x2d4   :  { %v315_v58 = vadd.f32 %v5540_v4, %v295_v12  ;;  %v1552_v16 = vrot.slane %v5653_v25, %v5585_v41  ;;  %v247_v46 = vadd.f32 1e-12, %v231_v50 }
 0x2d6   :  { %4347 = vmatprep.mubr.msk.f32.mxu0 %vm71_vm0, %v315_v58  ;;  %v1569_v37 = vsel %vm1169_vm6, %v1552_v16, %v1568_v17  ;;  %4546 = vrsqrt.f32 %v247_v46 }
 0x2d7   :  { %v5662_v3 = vpop.xlane.xlu1 %1473 }
 0x2d8   :  { %v1556_v53 = vrot.slane %v5662_v3, %v5585_v41 }
 0x2da   :  { %v1570_v48 = vsel %vm1171_vm7, %v1556_v53, %v1569_v37 }
 0x2db   :  { %v4543_v1 = vpop.eup %4542  ;;  %v210_v7 = vpop.xlane.xlu1 %209  ;;  %v1577_v2 = vsel %vm1573_vm8, %v1570_v48, -inf }
 0x2dc   :  { %v230_v24 = vmul.f32 0.03125, %v210_v7  ;;  %1578 = vmax.xlane.f32.xlu1 %v1577_v2  ;;  %v276_v44 = vmul.f32 %v4543_v1, %v5483_v21  ;;  %v4807_v21 = vmov 0   ;;  %v5700_v7 = vsub.s32 6, %v5057_v20 }
 0x2dd   :  { %4483 = vset.pattern.permute.xlu1 %v4807_v21  ;;  %4482 = vset.pattern.permute.xlu0 %v4807_v21 }
 0x2de   :  { %v246_v33 = vadd.f32 1e-12, %v230_v24  ;;  %v296_v26 = vmul.f32 %v5536_v6, %v276_v44 }
 0x2df   :  { %v4545_v62 = vpop.eup %4544  ;;  %v216_v36 = vpop.xlane.xlu1 %215 }
 0x2e0   :  { %4548 = vrsqrt.f32 %v246_v33  ;;  %v232_v61 = vmul.f32 0.03125, %v216_v36  ;;  %v316_v54 = vadd.f32 %v5540_v4, %v296_v26  ;;  %v277_v30 = vmul.f32 %v4545_v62, %v5487_v43 }
 0x2e2   :  { %v248_v35 = vadd.f32 1e-12, %v232_v61  ;;  %4348 = vmatmul.mubr.msk.f32.gmra.mxu0 %vm71_vm0, %v316_v54  ;;  %v297_v57 = vmul.f32 %v5536_v6, %v277_v30 }
 0x2e3   :  { %v4547_v14 = vpop.eup %4546 }
 0x2e4   :  { %4550 = vrsqrt.f32 %v248_v35  ;;  %v317_v22 = vadd.f32 %v5540_v4, %v297_v57  ;;  %v279_v19 = vmul.f32 %v4547_v14, %v5505_v38 }
 0x2e6   :  { %4350 = vmatprep.mubr.msk.f32.mxu0 %vm71_vm0, %v317_v22  ;;  %v299_v43 = vmul.f32 %v5536_v6, %v279_v19 }
 0x2e8   :  { %v319_v50 = vadd.f32 %v5540_v4, %v299_v43 }
 0x2ed   :  { %v4549_v39 = vpop.eup %4548 }
 0x2ee   :  { %v278_v40 = vmul.f32 %v4549_v39, %v5521_v8 }
 0x2f0   :  { %v298_v10 = vmul.f32 %v5536_v6, %v278_v40 }
 0x2f1   :  { %v4551_v31 = vpop.eup %4550 }
 0x2f2   :  { %v318_v12 = vadd.f32 %v5540_v4, %v298_v10  ;;  %v280_v55 = vmul.f32 %v4551_v31, %v5525_v51 }
 0x2f4   :  { %4351 = vmatmul.mubr.msk.f32.gmra.mxu0 %vm71_vm0, %v318_v12  ;;  %v300_v27 = vmul.f32 %v5536_v6, %v280_v55 }
 0x2f5   :  { %4353 = vmatprep.mubr.msk.f32.mxu0 %vm71_vm0, %v319_v50 }
 0x2f6   :  { %v320_v38 = vadd.f32 %v5540_v4, %v300_v27 }
 0x2f8   :  { %4354 = vmatmul.mubr.msk.f32.gmra.mxu0 %vm71_vm0, %v320_v38 }
 0x34e   :  { %v1576_v8 = vpop.xlane.xlu0 %1575 }
 0x34f   :  { %v1585_v58 = vrot.slane %v1576_v8, %v5395_v49  ;;  %v1589_v16 = vrot.slane %v1576_v8, %v5079_v52  ;;  %v1593_v11 = vrot.slane %v1576_v8, %v5154_v45  ;;  %v1597_v53 = vrot.slane %v1576_v8, %v5159_v13 }
 0x350   :  { %v1601_v4 = vrot.slane %v1576_v8, %v5346_v47  ;;  %v1609_v24 = vrot.slane %v1576_v8, %v5700_v7 }
 0x351   :  { %v1662_v51 = vsub.f32 %v5580_v18, %v1585_v58  ;;  %v1663_v46 = vsub.f32 %v5569_v9, %v1589_v16  ;;  %v1664_v6 = vsub.f32 %v5590_v32, %v1593_v11  ;;  %v1665_v48 = vsub.f32 %v5578_v15, %v1597_v53 }
 0x352   :  { %v1605_v18 = vrot.slane %v1576_v8, %v5360_v56  ;;  %v1666_v9 = vsub.f32 %v5596_v28, %v1601_v4  ;;  %v5705_v32 = vsub.s32 7, %v5057_v20  ;;  %v1668_v26 = vsub.f32 %v5612_v42, %v1609_v24 }
 0x353   :  { %v1678_v17 = vmul.f32 1.442695, %v1662_v51  ;;  %v1680_v37 = vmul.f32 1.442695, %v1663_v46  ;;  %v1682_v1 = vmul.f32 1.442695, %v1664_v6 }
 0x354   :  { %v1684_v2 = vmul.f32 1.442695, %v1665_v48  ;;  %v1667_v44 = vsub.f32 %v5599_v59, %v1605_v18  ;;  %v1686_v15 = vmul.f32 1.442695, %v1666_v9  ;;  %v1613_v33 = vrot.slane %v1576_v8, %v5705_v32 }
 0x355   :  { %4552 = vpow2.f32 %v1678_v17  ;;  %v1690_v54 = vmul.f32 1.442695, %v1668_v26 }
 0x356   :  { %4554 = vpow2.f32 %v1680_v37  ;;  %v1688_v36 = vmul.f32 1.442695, %v1667_v44  ;;  %v1669_v61 = vsub.f32 %v5607_v63, %v1613_v33 }
 0x357   :  { %4556 = vpow2.f32 %v1682_v1 }
 0x358   :  { %4558 = vpow2.f32 %v1684_v2  ;;  %v1692_v21 = vmul.f32 1.442695, %v1669_v61 }
 0x359   :  { %4560 = vpow2.f32 %v1686_v15 }
 0x35a   :  { %4562 = vpow2.f32 %v1688_v36 }
 0x35b   :  { %4564 = vpow2.f32 %v1690_v54 }
 0x35e   :  { %v4334_v1 = vpop.f32.mrf.mxu0 }
 0x35f   :  { %v520_v54 = vmul.f32 1.442695, %v4334_v1 }
 0x360   :  { %v439_v18 = vpop.f32.mrf.mxu0 }
 0x362   :  { %v5711_v62 = vpop.eup %4552 }
 0x363   :  { %v5713_v28 = vpop.eup %4554  ;;  %1727 = vperm.xlu0 %4482, %v5711_v62  }
 0x364   :  { %1730 = vperm.xlu1 %4483, %v5713_v28   ;;  %v5721_v57 = vpop.eup %4556 }
 0x365   :  { %v1579_v59 = vpop.xlane.xlu1 %1578  ;;  %v5729_v43 = vpop.eup %4558 }
 0x366   :  { %v1617_v30 = vrot.slane %v1579_v59, %v5395_v49  ;;  %v1621_v35 = vrot.slane %v1579_v59, %v5079_v52  ;;  %v1629_v42 = vrot.slane %v1579_v59, %v5159_v13  ;;  %v1637_v14 = vrot.slane %v1579_v59, %v5360_v56  ;;  %v5736_v50 = vpop.eup %4560 }
 0x367   :  { %v1625_v19 = vrot.slane %v1579_v59, %v5154_v45  ;;  %v1645_v10 = vrot.slane %v1579_v59, %v5705_v32  ;;  %v1633_v12 = vrot.slane %v1579_v59, %v5346_v47  ;;  %v1641_v38 = vrot.slane %v1579_v59, %v5700_v7  ;;  %v5742_v58 = vpop.eup %4562  ;;  %v4337_v9 = vpop.f32.mrf.mxu0 }
 0x368   :  { %v1671_v22 = vsub.f32 %v5622_v34, %v1621_v35  ;;  %1733 = vperm.xlu1 %4483, %v5721_v57   ;;  %v1673_v63 = vsub.f32 %v5628_v29, %v1629_v42  ;;  %v1670_v39 = vsub.f32 %v5618_v0, %v1617_v30  ;;  %v1675_v34 = vsub.f32 %v5642_v60, %v1637_v14  ;;  %v5746_v51 = vpop.eup %4564 }
 0x369   :  { %v1672_v29 = vsub.f32 %v5632_v23, %v1625_v19  ;;  %v1677_v0 = vsub.f32 %v5662_v3, %v1645_v10  ;;  %v1674_v60 = vsub.f32 %v5626_v5, %v1633_v12  ;;  %v1676_v16 = vsub.f32 %v5653_v25, %v1641_v38  ;;  %v449_v2 = vpop.f32.mrf.mxu0 }
 0x36a   :  { %v1696_v40 = vmul.f32 1.442695, %v1671_v22  ;;  %v1700_v31 = vmul.f32 1.442695, %v1673_v63  ;;  %v1694_v55 = vmul.f32 1.442695, %v1670_v39 }
 0x36b   :  { %v1704_v27 = vmul.f32 1.442695, %v1675_v34  ;;  %v1698_v8 = vmul.f32 1.442695, %v1672_v29  ;;  %v1708_v23 = vmul.f32 1.442695, %v1677_v0 }
 0x36c   :  { %1736 = vperm.xlu1 %4483, %v5729_v43   ;;  %4566 = vpow2.f32 %v1696_v40  ;;  %v1702_v11 = vmul.f32 1.442695, %v1674_v60  ;;  %v1706_v5 = vmul.f32 1.442695, %v1676_v16  ;;  %v4340_v24 = vpop.f32.mrf.mxu0  ;;  %v524_v42 = vmul.f32 1.442695, %v4337_v9 }
 0x36d   :  { %4568 = vpow2.f32 %v1692_v21  ;;  %v528_v10 = vmul.f32 1.442695, %v4340_v24 }
 0x36e   :  { %4570 = vpow2.f32 %v1700_v31  ;;  %v5776_v15 = vpop.f32.mrf.mxu0 }
 0x36f   :  { %4572 = vpow2.f32 %v1694_v55 }
 0x370   :  { %1739 = vperm.xlu1 %4483, %v5736_v50   ;;  %4574 = vpow2.f32 %v1704_v27  ;;  %v4343_v26 = vpop.f32.mrf.mxu0 }
 0x371   :  { %4576 = vpow2.f32 %v1698_v8  ;;  %v532_v8 = vmul.f32 1.442695, %v4343_v26 }
 0x372   :  { %4578 = vpow2.f32 %v1708_v23  ;;  %v5778_v61 = vpop.f32.mrf.mxu0 }
 0x373   :  { %4580 = vpow2.f32 %v1702_v11 }
 0x374   :  { %1742 = vperm.xlu1 %4483, %v5742_v58   ;;  %4582 = vpow2.f32 %v1706_v5 }
 0x375   :  { %4584 = vpow2.f32 %v520_v54 }
 0x376   :  { %4586 = vpow2.f32 %v524_v42 }
 0x377   :  { %4588 = vpow2.f32 %v528_v10 }
 0x378   :  { %1745 = vperm.xlu1 %4483, %v5746_v51   ;;  %4590 = vpow2.f32 %v532_v8 }
 0x379   :  { %v5749_v3 = vpop.eup %4566 }
 0x37a   :  { %v5751_v46 = vpop.eup %4568  ;;  %1754 = vperm.xlu0 %4482, %v5749_v3  }
 0x37b   :  { %v5755_v53 = vpop.eup %4570 }
 0x37c   :  { %1748 = vperm.xlu1 %4483, %v5751_v46   ;;  %v5757_v25 = vpop.eup %4572 }
 0x37d   :  { %v5761_v6 = vpop.eup %4574 }
 0x37e   :  { %1760 = vperm.xlu0 %4482, %v5755_v53   ;;  %v5763_v17 = vpop.eup %4576 }
 0x37f   :  { %v5767_v37 = vpop.eup %4578 }
 0x380   :  { %1751 = vperm.xlu1 %4483, %v5757_v25   ;;  %v5769_v4 = vpop.eup %4580 }
 0x381   :  { %v5773_v48 = vpop.eup %4582 }
 0x382   :  { %1766 = vperm.xlu0 %4482, %v5761_v6   ;;  %v5802_v26 = vpop.eup %4584 }
 0x384   :  { %1757 = vperm.xlu1 %4483, %v5763_v17  }
 0x386   :  { %1772 = vperm.xlu0 %4482, %v5767_v37  }
 0x388   :  { %1763 = vperm.xlu1 %4483, %v5769_v4  }
 0x38c   :  { %1769 = vperm.xlu1 %4483, %v5773_v48  }
 0x392   :  { %v4346_v30 = vpop.f32.mrf.mxu0 }
 0x394   :  { %v5780_v21 = vpop.f32.mrf.mxu0 }
 0x3a2   :  { %v4349_v39 = vpop.f32.mrf.mxu0 }
 0x3a4   :  { %v5791_v27 = vpop.f32.mrf.mxu0 }
 0x3b4   :  { %v5795_v11 = vpop.f32.mrf.mxu0 }
 0x3de   :  { %v1728_v35 = vpop.permute.xlu0 %1727 }
 0x3df   :  { %v1731_v44 = vpop.permute.xlu1 %1730  ;;  %v1777_v63 = vrot.slane %v1728_v35, %v5585_v41  ;;  %v499_v35 = vpop.f32.mrf.mxu0 }
 0x3e0   :  { %v1781_v14 = vrot.slane %v1731_v44, %v5585_v41 }
 0x3e1   :  { %v4355_v10 = vpop.f32.mrf.mxu0 }
 0x3e2   :  { %v1838_v12 = vsel %vm1154_vm1, %v1781_v14, %v1777_v63 }
 0x3e3   :  { %v1734_v33 = vpop.permute.xlu1 %1733 }
 0x3e4   :  { %v1785_v19 = vrot.slane %v1734_v33, %v5585_v41  ;;  %v536_v33 = vmul.f32 1.442695, %v4346_v30  ;;  %v5808_v30 = vpop.eup %4586 }
 0x3e6   :  { %v1839_v55 = vsel %vm1157_vm2, %v1785_v19, %v1838_v12  ;;  %4592 = vpow2.f32 %v536_v33  ;;  %v554_v19 = vsel %vm550_vm9, %v5802_v26, 0.0 }
 0x3e7   :  { %v1737_v36 = vpop.permute.xlu1 %1736 }
 0x3e8   :  { %v1789_v40 = vrot.slane %v1737_v36, %v5585_v41 }
 0x3ea   :  { %v1840_v38 = vsel %vm1160_vm3, %v1789_v40, %v1839_v55  ;;  %v522_v40 = vmul.f32 1.442695, %v449_v2  ;;  %v526_v2 = vmul.f32 1.442695, %v5776_v15  ;;  %v530_v15 = vmul.f32 1.442695, %v5778_v61 }
 0x3eb   :  { %v1740_v59 = vpop.permute.xlu1 %1739  ;;  %v534_v61 = vmul.f32 1.442695, %v5780_v21 }
 0x3ec   :  { %v1793_v34 = vrot.slane %v1740_v59, %v5585_v41  ;;  %v518_v59 = vmul.f32 1.442695, %v439_v18 }
 0x3ee   :  { %v1841_v23 = vsel %vm1163_vm4, %v1793_v34, %v1840_v38  ;;  %4594 = vpow2.f32 %v518_v59  ;;  %v5816_v38 = vpop.eup %4588 }
 0x3ef   :  { %v1743_v22 = vpop.permute.xlu1 %1742  ;;  %v5825_v33 = vpop.eup %4590 }
 0x3f0   :  { %v1797_v29 = vrot.slane %v1743_v22, %v5585_v41  ;;  %v540_v22 = vmul.f32 1.442695, %v4349_v39  ;;  %v542_v39 = vmul.f32 1.442695, %v499_v35 }
 0x3f2   :  { %v1842_v5 = vsel %vm1166_vm5, %v1797_v29, %v1841_v23  ;;  %4596 = vpow2.f32 %v540_v22 }
 0x3f3   :  { %v1746_v31 = vpop.permute.xlu1 %1745  ;;  %4598 = vpow2.f32 %v522_v40 }
 0x3f4   :  { %v1801_v0 = vrot.slane %v1746_v31, %v5585_v41  ;;  %4600 = vpow2.f32 %v542_v39  ;;  %v544_v39 = vmul.f32 1.442695, %v5795_v11 }
 0x3f5   :  { %v1755_v60 = vpop.permute.xlu0 %1754  ;;  %4602 = vpow2.f32 %v526_v2  ;;  %v548_v2 = vmul.f32 1.442695, %v4355_v10 }
 0x3f6   :  { %v1843_v9 = vsel %vm1169_vm6, %v1801_v0, %v1842_v5  ;;  %v1813_v14 = vrot.slane %v1755_v60, %v5585_v41  ;;  %v560_v0 = vsel %vm550_vm9, %v5808_v30, 0.0  ;;  %v509_v60 = vpop.f32.mrf.mxu0 }
 0x3f7   :  { %v1749_v16 = vpop.permute.xlu1 %1748 }
 0x3f8   :  { %v1805_v1 = vrot.slane %v1749_v16, %v5585_v41 }
 0x3f9   :  { %v1761_v24 = vpop.permute.xlu0 %1760 }
 0x3fa   :  { %v1844_v44 = vsel %vm1171_vm7, %v1805_v1, %v1843_v9  ;;  %v1821_v29 = vrot.slane %v1761_v24, %v5585_v41  ;;  %v546_v1 = vmul.f32 1.442695, %v509_v60 }
 0x3fb   :  { %v1752_v36 = vpop.permute.xlu1 %1751  ;;  %v1854_v54 = vsel %vm1573_vm8, %v1844_v44, 0.0  ;;  %v566_v44 = vsel %vm550_vm9, %v5816_v38, 0.0 }
 0x3fc   :  { %1855 = vadd.xlane.f32.xlu1 %v1854_v54  ;;  %v1809_v42 = vrot.slane %v1752_v36, %v5585_v41  ;;  %4604 = vpow2.f32 %v546_v1 }
 0x3fd   :  { %v1767_v34 = vpop.permute.xlu0 %1766  ;;  %4606 = vpow2.f32 %v530_v15 }
 0x3fe   :  { %v1845_v31 = vsel %vm1154_vm1, %v1813_v14, %v1809_v42  ;;  %v1829_v9 = vrot.slane %v1767_v34, %v5585_v41  ;;  %v572_v42 = vsel %vm550_vm9, %v5825_v33, 0.0  ;;  %v5835_v14 = vpop.eup %4592  ;;  %4608 = vpow2.f32 %v534_v61 }
 0x3ff   :  { %v1758_v63 = vpop.permute.xlu1 %1757  ;;  %v538_v34 = vmul.f32 1.442695, %v5791_v27 }
 0x400   :  { %v1817_v18 = vrot.slane %v1758_v63, %v5585_v41  ;;  %555 = vadd.xlane.f32.xlu1 %v554_v19  ;;  %v5839_v19 = vpop.eup %4594 }
 0x401   :  { %v1773_v16 = vpop.permute.xlu0 %1772  ;;  %v5843_v40 = vpop.eup %4596  ;;  %4610 = vpow2.f32 %v538_v34 }
 0x402   :  { %v1846_v12 = vsel %vm1157_vm2, %v1817_v18, %v1845_v31  ;;  %v1837_v54 = vrot.slane %v1773_v16, %v5585_v41  ;;  %v551_v18 = vsel %vm550_vm9, %v5839_v19, 0.0  ;;  %v5848_v31 = vpop.eup %4598  ;;  %v584_v21 = vsel %vm550_vm9, %v5843_v40, 0.0 }
 0x403   :  { %v1764_v55 = vpop.permute.xlu1 %1763  ;;  %v1847_v23 = vsel %vm1160_vm3, %v1821_v29, %v1846_v12  ;;  %v5852_v12 = vpop.eup %4600  ;;  %v557_v29 = vsel %vm550_vm9, %v5848_v31, 0.0  ;;  %4612 = vpow2.f32 %v544_v39 }
 0x404   :  { %v1825_v8 = vrot.slane %v1764_v55, %v5585_v41  ;;  %561 = vadd.xlane.f32.xlu1 %v560_v0  ;;  %v5857_v27 = vpop.eup %4602  ;;  %v587_v55 = vsel %vm550_vm9, %v5852_v12, 0.0  ;;  %4614 = vpow2.f32 %v548_v2 }
 0x405   :  { %v563_v60 = vsel %vm550_vm9, %v5857_v27, 0.0 }
 0x406   :  { %v1848_v5 = vsel %vm1163_vm4, %v1825_v8, %v1847_v23 }
 0x407   :  { %v1770_v24 = vpop.permute.xlu1 %1769  ;;  %v1849_v59 = vsel %vm1166_vm5, %v1829_v9, %v1848_v5 }
 0x408   :  { %v1833_v36 = vrot.slane %v1770_v24, %v5585_v41  ;;  %567 = vadd.xlane.f32.xlu1 %v566_v44  ;;  %v578_v41 = vsel %vm550_vm9, %v5835_v14, 0.0 }
 0x409   :  { %v5861_v0 = vpop.eup %4604 }
 0x40a   :  { %v1850_v35 = vsel %vm1169_vm6, %v1833_v36, %v1849_v59  ;;  %v5865_v8 = vpop.eup %4606  ;;  %v593_v11 = vsel %vm550_vm9, %v5861_v0, 0.0 }
 0x40b   :  { %v1851_v22 = vsel %vm1171_vm7, %v1837_v54, %v1850_v35  ;;  %v569_v23 = vsel %vm550_vm9, %v5865_v8, 0.0  ;;  %v5871_v16 = vpop.eup %4608 }
 0x40c   :  { %573 = vadd.xlane.f32.xlu1 %v572_v42  ;;  %v1857_v63 = vsel %vm1573_vm8, %v1851_v22, 0.0  ;;  %v575_v10 = vsel %vm550_vm9, %v5871_v16, 0.0 }
 0x40d   :  { %1858 = vadd.xlane.f32.xlu0 %v1857_v63 }
 0x40e   :  { %v5875_v5 = vpop.eup %4610 }
 0x40f   :  { %v581_v1 = vsel %vm550_vm9, %v5875_v5, 0.0 }
 0x410   :  { %579 = vadd.xlane.f32.xlu1 %v578_v41  ;;  %v5879_v9 = vpop.eup %4612 }
 0x411   :  { %552 = vadd.xlane.f32.xlu0 %v551_v18  ;;  %v590_v24 = vsel %vm550_vm9, %v5879_v9, 0.0  ;;  %v5883_v44 = vpop.eup %4614 }
 0x412   :  { %v596_v15 = vsel %vm550_vm9, %v5883_v44, 0.0 }
 0x414   :  { %585 = vadd.xlane.f32.xlu1 %v584_v21 }
 0x415   :  { %558 = vadd.xlane.f32.xlu0 %v557_v29 }
 0x418   :  { %588 = vadd.xlane.f32.xlu1 %v587_v55 }
 0x419   :  { %564 = vadd.xlane.f32.xlu0 %v563_v60 }
 0x41c   :  { %594 = vadd.xlane.f32.xlu1 %v593_v11 }
 0x41d   :  { %570 = vadd.xlane.f32.xlu0 %v569_v23 }
 0x421   :  { %576 = vadd.xlane.f32.xlu0 %v575_v10 }
 0x425   :  { %582 = vadd.xlane.f32.xlu0 %v581_v1 }
 0x429   :  { %591 = vadd.xlane.f32.xlu0 %v590_v24 }
 0x42d   :  { %597 = vadd.xlane.f32.xlu0 %v596_v15 }
 0x485   :  { %v1856_v36 = vpop.xlane.xlu1 %1855 }
 0x486   :  { %v1865_v54 = vrot.slane %v1856_v36, %v5395_v49  ;;  %v1869_v59 = vrot.slane %v1856_v36, %v5079_v52  ;;  %v1873_v35 = vrot.slane %v1856_v36, %v5154_v45  ;;  %v1877_v42 = vrot.slane %v1856_v36, %v5159_v13 }
 0x487   :  { %v1881_v22 = vrot.slane %v1856_v36, %v5346_v47  ;;  %v1885_v61 = vrot.slane %v1856_v36, %v5360_v56  ;;  %v1893_v63 = vrot.slane %v1856_v36, %v5705_v32  ;;  %v1889_v41 = vrot.slane %v1856_v36, %v5700_v7 }
 0x488   :  { %4616 = vrcp.f32 %v1865_v54 }
 0x489   :  { %4618 = vrcp.f32 %v1869_v59 }
 0x48a   :  { %4620 = vrcp.f32 %v1873_v35 }
 0x48b   :  { %4622 = vrcp.f32 %v1877_v42 }
 0x48c   :  { %4624 = vrcp.f32 %v1881_v22 }
 0x48d   :  { %4626 = vrcp.f32 %v1885_v61 }
 0x48e   :  { %4628 = vrcp.f32 %v1893_v63 }
 0x48f   :  { %4630 = vrcp.f32 %v1889_v41 }
 0x495   :  { %v4617_v34 = vpop.eup %4616 }
 0x496   :  { %v4619_v18 = vpop.eup %4618  ;;  %v1859_v21 = vpop.xlane.xlu0 %1858  ;;  %v1943_v39 = vmul.f32 %v4617_v34, %v5711_v62 }
 0x497   :  { %v4621_v29 = vpop.eup %4620  ;;  %v1897_v55 = vrot.slane %v1859_v21, %v5395_v49  ;;  %v1901_v2 = vrot.slane %v1859_v21, %v5079_v52  ;;  %v1909_v60 = vrot.slane %v1859_v21, %v5159_v13  ;;  %v1905_v11 = vrot.slane %v1859_v21, %v5154_v45 }
 0x498   :  { %1976 = vperm.xlu0 %4482, %v1943_v39   ;;  %v1945_v23 = vmul.f32 %v4619_v18, %v5713_v28  ;;  %v4623_v10 = vpop.eup %4622  ;;  %v1947_v1 = vmul.f32 %v4621_v29, %v5721_v57  ;;  %v1917_v62 = vrot.slane %v1859_v21, %v5360_v56  ;;  %v1913_v52 = vrot.slane %v1859_v21, %v5346_v47 }
 0x499   :  { %4632 = vrcp.f32 %v1897_v55  ;;  %v4625_v24 = vpop.eup %4624  ;;  %v1949_v13 = vmul.f32 %v4623_v10, %v5729_v43  ;;  %v1925_v28 = vrot.slane %v1859_v21, %v5705_v32  ;;  %v1921_v57 = vrot.slane %v1859_v21, %v5700_v7 }
 0x49a   :  { %4634 = vrcp.f32 %v1901_v2  ;;  %1981 = vperm.xlu1 %4483, %v1945_v23   ;;  %v4627_v49 = vpop.eup %4626  ;;  %v1951_v45 = vmul.f32 %v4625_v24, %v5736_v50 }
 0x49b   :  { %4636 = vrcp.f32 %v1909_v60  ;;  %v4629_v15 = vpop.eup %4628  ;;  %v1953_v56 = vmul.f32 %v4627_v49, %v5742_v58 }
 0x49c   :  { %1986 = vperm.xlu0 %4482, %v1947_v1   ;;  %4638 = vrcp.f32 %v1905_v11  ;;  %v4631_v36 = vpop.eup %4630  ;;  %v1957_v47 = vmul.f32 %v4629_v15, %v5751_v46 }
 0x49d   :  { %4640 = vrcp.f32 %v1917_v62  ;;  %v1955_v43 = vmul.f32 %v4631_v36, %v5746_v51 }
 0x49e   :  { %1991 = vperm.xlu1 %4483, %v1949_v13   ;;  %4642 = vrcp.f32 %v1913_v52 }
 0x49f   :  { %4644 = vrcp.f32 %v1925_v28 }
 0x4a0   :  { %1996 = vperm.xlu0 %4482, %v1951_v45   ;;  %4646 = vrcp.f32 %v1921_v57 }
 0x4a2   :  { %2001 = vperm.xlu1 %4483, %v1953_v56  }
 0x4a4   :  { %2011 = vperm.xlu0 %4482, %v1957_v47  }
 0x4a6   :  { %v4633_v50 = vpop.eup %4632  ;;  %2006 = vperm.xlu1 %4483, %v1955_v43  }
 0x4a7   :  { %v4635_v54 = vpop.eup %4634  ;;  %v1959_v59 = vmul.f32 %v4633_v50, %v5757_v25 }
 0x4a8   :  { %v1961_v35 = vmul.f32 %v4635_v54, %v5749_v3  ;;  %v4637_v42 = vpop.eup %4636 }
 0x4a9   :  { %v4639_v22 = vpop.eup %4638  ;;  %v1965_v58 = vmul.f32 %v4637_v42, %v5755_v53  ;;  %v4808_v53 = vmov 0.0  }
 0x4aa   :  { %2021 = vperm.xlu0 %4482, %v1961_v35   ;;  %2016 = vperm.xlu1 %4483, %v1959_v59   ;;  %v4641_v46 = vpop.eup %4640  ;;  %v1963_v61 = vmul.f32 %v4639_v22, %v5763_v17  ;;  %v4719_v17 = vld [vmem:[#allocation2] sm:$0xff] }
 0x4ab   :  { %v4643_v63 = vpop.eup %4642  ;;  %v1969_v51 = vmul.f32 %v4641_v46, %v5761_v6  ;;  %4388 = vmatprep.subr.mxu0 %v4808_v53  ;;  %4393 = vmatprep.subr.mxu1 %v4808_v53  ;;  %v4720_v6 = vld [vmem:[#allocation2 + $0x8] sm:$0xff] }
 0x4ac   :  { %v4645_v41 = vpop.eup %4644  ;;  %v1967_v34 = vmul.f32 %v4643_v63, %v5769_v4  ;;  %4389 = vmatpush3.msra.mxu0 %v4719_v17  ;;  %4394 = vmatpush3.msra.mxu1 %v4720_v6  ;;  %v556_v4 = vpop.xlane.xlu1 %555 }
 0x4ad   :  { %v4647_v25 = vpop.eup %4646  ;;  %v1973_v3 = vmul.f32 %v4645_v41, %v5767_v37  ;;  %4390 = vmatprep.mubr.msk.f32.mxu0 %vm4809_vm10, %v4808_v53  ;;  %4395 = vmatprep.mubr.msk.f32.mxu1 %vm4809_vm10, %v4808_v53  ;;  %v553_v37 = vpop.xlane.xlu0 %552 }
 0x4ae   :  { %2031 = vperm.xlu0 %4482, %v1965_v58   ;;  %2026 = vperm.xlu1 %4483, %v1963_v61   ;;  %v1971_v18 = vmul.f32 %v4647_v25, %v5773_v48  ;;  %4648 = vrcp.f32 %v553_v37 }
 0x4af   :  { %4398 = vmatprep.subr.mxu0 %v4808_v53  ;;  %4403 = vmatprep.subr.mxu1 %v4808_v53  ;;  %4650 = vrcp.f32 %v556_v4 }
 0x4b0   :  { %v562_v21 = vpop.xlane.xlu1 %561 }
 0x4b1   :  { %v559_v48 = vpop.xlane.xlu0 %558 }
 0x4b2   :  { %2041 = vperm.xlu0 %4482, %v1969_v51   ;;  %2036 = vperm.xlu1 %4483, %v1967_v34   ;;  %4652 = vrcp.f32 %v559_v48 }
 0x4b3   :  { %4654 = vrcp.f32 %v562_v21 }
 0x4b4   :  { %v568_v29 = vpop.xlane.xlu1 %567 }
 0x4b5   :  { %v565_v39 = vpop.xlane.xlu0 %564  ;;  %4656 = vrcp.f32 %v568_v29 }
 0x4b6   :  { %2051 = vperm.xlu0 %4482, %v1973_v3   ;;  %2046 = vperm.xlu1 %4483, %v1971_v18  }
 0x4b8   :  { %v574_v2 = vpop.xlane.xlu1 %573 }
 0x4b9   :  { %v571_v55 = vpop.xlane.xlu0 %570  ;;  %4658 = vrcp.f32 %v574_v2 }
 0x4ba   :  { %4660 = vrcp.f32 %v565_v39 }
 0x4bb   :  { %v4649_v62 = vpop.eup %4648 }
 0x4bc   :  { %v580_v11 = vpop.xlane.xlu1 %579  ;;  %v4651_v13 = vpop.eup %4650  ;;  %v600_v45 = vmul.f32 %v4649_v62, %v5839_v19 }
 0x4bd   :  { %v577_v60 = vpop.xlane.xlu0 %576  ;;  %4662 = vrcp.f32 %v580_v11  ;;  %v602_v56 = vmul.f32 %v4651_v13, %v5802_v26 }
 0x4be   :  { %4664 = vrcp.f32 %v571_v55 }
 0x4bf   :  { %v4653_v28 = vpop.eup %4652 }
 0x4c0   :  { %v586_v10 = vpop.xlane.xlu1 %585  ;;  %v604_v43 = vmul.f32 %v4653_v28, %v5848_v31  ;;  %v4655_v54 = vpop.eup %4654 }
 0x4c1   :  { %v583_v23 = vpop.xlane.xlu0 %582  ;;  %4666 = vrcp.f32 %v586_v10  ;;  %v606_v58 = vmul.f32 %v4655_v54, %v5808_v30 }
 0x4c2   :  { %4668 = vrcp.f32 %v577_v60  ;;  %v4657_v35 = vpop.eup %4656 }
 0x4c3   :  { %v610_v26 = vmul.f32 %v4657_v35, %v5816_v38 }
 0x4c4   :  { %v589_v24 = vpop.xlane.xlu1 %588 }
 0x4c5   :  { %v592_v1 = vpop.xlane.xlu0 %591 }
 0x4c6   :  { %v4659_v22 = vpop.eup %4658  ;;  %4670 = vrcp.f32 %v592_v1 }
 0x4c7   :  { %4672 = vrcp.f32 %v583_v23  ;;  %v4661_v46 = vpop.eup %4660  ;;  %v614_v51 = vmul.f32 %v4659_v22, %v5825_v33  ;;  %v4726_v22 = vld [vmem:[#allocation2 + $0x38] sm:$0xff] }
 0x4c8   :  { %v595_v49 = vpop.xlane.xlu1 %594  ;;  %v608_v25 = vmul.f32 %v4661_v46, %v5857_v27  ;;  %v4727_v46 = vld [vmem:[#allocation2 + $0x40] sm:$0xff] }
 0x4c9   :  { %v598_v52 = vpop.xlane.xlu0 %597 }
 0x4ca   :  { %4674 = vrcp.f32 %v598_v52  ;;  %v4663_v34 = vpop.eup %4662 }
 0x4cb   :  { %4676 = vrcp.f32 %v589_v24  ;;  %v4665_v18 = vpop.eup %4664  ;;  %v618_v38 = vmul.f32 %v4663_v34, %v5835_v14 }
 0x4cc   :  { %4678 = vrcp.f32 %v595_v49  ;;  %v612_v37 = vmul.f32 %v4665_v18, %v5865_v8  ;;  %v4732_v18 = vld [vmem:[#allocation2 + $0x68] sm:$0xff] }
 0x4ce   :  { %v4667_v6 = vpop.eup %4666 }
 0x4cf   :  { %v4669_v4 = vpop.eup %4668  ;;  %v622_v27 = vmul.f32 %v4667_v6, %v5843_v40 }
 0x4d0   :  { %v616_v55 = vmul.f32 %v4669_v4, %v5871_v16 }
 0x4d3   :  { %v4671_v29 = vpop.eup %4670 }
 0x4d4   :  { %v4673_v14 = vpop.eup %4672  ;;  %v626_v8 = vmul.f32 %v4671_v29, %v5879_v9 }
 0x4d5   :  { %v620_v1 = vmul.f32 %v4673_v14, %v5875_v5 }
 0x4d7   :  { %v4675_v10 = vpop.eup %4674 }
 0x4d8   :  { %v4677_v62 = vpop.eup %4676  ;;  %v630_v16 = vmul.f32 %v4675_v10, %v5883_v44  ;;  %v4722_v44 = vld [vmem:[#allocation2 + $0x18] sm:$0xff] }
 0x4d9   :  { %v624_v49 = vmul.f32 %v4677_v62, %v5852_v12 }
 0x513   :  { %v1977_v15 = vpop.permute.xlu0 %1976 }
 0x514   :  { %v2054_v57 = vmul.f32 %v1977_v15, %v600_v45  ;;  %v4679_v15 = vpop.eup %4678 }
 0x515   :  { %v1982_v36 = vpop.permute.xlu1 %1981  ;;  %v628_v5 = vmul.f32 %v4679_v15, %v5861_v0 }
 0x516   :  { %2070 = vxpose.xlu1.b32.start.end [1/1] (short) (narrow) %v2054_v57, 8  ;;  %v2055_v47 = vmul.f32 %v1982_v36, %v602_v56 }
 0x517   :  { %v1987_v50 = vpop.permute.xlu0 %1986 }
 0x518   :  { %2175 = vxpose.xlu0.b32.start.end [1/1] (short) (narrow) %v2055_v47, 8  ;;  %v2056_v59 = vmul.f32 %v1987_v50, %v604_v43  ;;  %v4721_v47 = vld [vmem:[#allocation2 + $0x10] sm:$0xff]  ;;  %v4723_v43 = vld [vmem:[#allocation2 + $0x20] sm:$0xff] }
 0x519   :  { %v1992_v19 = vpop.permute.xlu1 %1991 }
 0x51a   :  { %v2057_v31 = vmul.f32 %v1992_v19, %v606_v58 }
 0x51b   :  { %v1997_v42 = vpop.permute.xlu0 %1996 }
 0x51c   :  { %2280 = vxpose.xlu0.b32.start.end [1/1] (short) (narrow) %v2056_v59, 8  ;;  %v2058_v17 = vmul.f32 %v1997_v42, %v608_v25  ;;  %v4724_v59 = vld [vmem:[#allocation2 + $0x28] sm:$0xff]  ;;  %v4725_v42 = vld [vmem:[#allocation2 + $0x30] sm:$0xff] }
 0x51d   :  { %v2002_v61 = vpop.permute.xlu1 %2001 }
 0x51e   :  { %v2059_v63 = vmul.f32 %v2002_v61, %v610_v26  ;;  %v4728_v61 = vld [vmem:[#allocation2 + $0x48] sm:$0xff] }
 0x51f   :  { %v2012_v41 = vpop.permute.xlu0 %2011 }
 0x520   :  { %2595 = vxpose.xlu1.b32.start.end [1/1] (short) (narrow) %v2059_v63, 8  ;;  %2385 = vxpose.xlu0.b32.start.end [1/1] (short) (narrow) %v2057_v31, 8  ;;  %v2061_v3 = vmul.f32 %v2012_v41, %v614_v51  ;;  %v4729_v51 = vld [vmem:[#allocation2 + $0x50] sm:$0xff]  ;;  %v4730_v41 = vld [vmem:[#allocation2 + $0x58] sm:$0xff] }
 0x521   :  { %v2007_v30 = vpop.permute.xlu1 %2006 }
 0x522   :  { %v2060_v39 = vmul.f32 %v2007_v30, %v612_v37 }
 0x524   :  { %2490 = vxpose.xlu0.b32.start.end [1/1] (short) (narrow) %v2058_v17, 8  ;;  %2805 = vxpose.xlu1.b32.start.end [1/1] (short) (narrow) %v2061_v3, 8  ;;  %v4731_v3 = vld [vmem:[#allocation2 + $0x60] sm:$0xff]  ;;  %v4733_v17 = vld [vmem:[#allocation2 + $0x70] sm:$0xff] }
 0x525   :  { %v2022_v33 = vpop.permute.xlu0 %2021  ;;  %v2017_v48 = vpop.permute.xlu1 %2016 }
 0x526   :  { %v2063_v21 = vmul.f32 %v2022_v33, %v618_v38  ;;  %v2062_v23 = vmul.f32 %v2017_v48, %v616_v55  ;;  %v4734_v38 = vld [vmem:[#allocation2 + $0x78] sm:$0xff]  ;;  %v6002_v33 = vld [vmem:[%s6259_s5] sm:$0xf]  ;;  %s4812_s5 = smov 64  }
 0x528   :  { %2700 = vxpose.xlu0.b32.start.end [1/1] (short) (narrow) %v2060_v39, 8  ;;  %3015 = vxpose.xlu1.b32.start.end [1/1] (short) (narrow) %v2063_v21, 8 }
 0x529   :  { %v2032_v2 = vpop.permute.xlu0 %2031  ;;  %v2027_v60 = vpop.permute.xlu1 %2026 }
 0x52a   :  { %v2065_v11 = vmul.f32 %v2032_v2, %v622_v27  ;;  %v2064_v13 = vmul.f32 %v2027_v60, %v620_v1 }
 0x52c   :  { %2910 = vxpose.xlu0.b32.start.end [1/1] (short) (narrow) %v2062_v23, 8  ;;  %3225 = vxpose.xlu1.b32.start.end [1/1] (short) (narrow) %v2065_v11, 8 }
 0x52d   :  { %v2042_v24 = vpop.permute.xlu0 %2041  ;;  %v2037_v40 = vpop.permute.xlu1 %2036 }
 0x52e   :  { %v2067_v52 = vmul.f32 %v2042_v24, %v626_v8  ;;  %v2066_v9 = vmul.f32 %v2037_v40, %v624_v49 }
 0x530   :  { %3120 = vxpose.xlu0.b32.start.end [1/1] (short) (narrow) %v2064_v13, 8  ;;  %3435 = vxpose.xlu1.b32.start.end [1/1] (short) (narrow) %v2067_v52, 8 }
 0x531   :  { %v2052_v45 = vpop.permute.xlu0 %2051  ;;  %v2047_v57 = vpop.permute.xlu1 %2046 }
 0x532   :  { %v2069_v28 = vmul.f32 %v2052_v45, %v630_v16  ;;  %v2068_v56 = vmul.f32 %v2047_v57, %v628_v5 }
 0x534   :  { %3330 = vxpose.xlu0.b32.start.end [1/1] (short) (narrow) %v2066_v9, 8  ;;  %3645 = vxpose.xlu1.b32.start.end [1/1] (short) (narrow) %v2069_v28, 8 }
 0x538   :  { %3540 = vxpose.xlu0.b32.start.end [1/1] (short) (narrow) %v2068_v56, 8 }
 0x592   :  { %v2086_v36 = vpop.trf.xlu1 }
 0x593   :  { %4391 = vmatmul.mubr.msk.f32.vlgmr.msra.gmra.mxu0 %vm1573_vm8, %v2086_v36 }
 0x594   :  { %4399 = vmatpush3.msra.mxu0 %v4721_v47  ;;  %4400 = vmatprep.mubr.msk.f32.mxu0 %vm4809_vm10, %v4808_v53  ;;  %v2191_v12 = vpop.trf.xlu0 }
 0x595   :  { %4408 = vmatprep.subr.mxu0 %v4808_v53  ;;  %4396 = vmatmul.mubr.msk.f32.vlgmr.msra.gmra.mxu1 %vm1573_vm8, %v2191_v12 }
 0x596   :  { %4404 = vmatpush3.msra.mxu1 %v4722_v44  ;;  %4405 = vmatprep.mubr.msk.f32.mxu1 %vm4809_vm10, %v4808_v53 }
 0x597   :  { %4413 = vmatprep.subr.mxu1 %v4808_v53 }
 0x598   :  { %v2296_v0 = vpop.trf.xlu0 }
 0x599   :  { %4401 = vmatmul.mubr.msk.f32.vlgmr.msra.gmra.mxu0 %vm1573_vm8, %v2296_v0 }
 0x59a   :  { %4409 = vmatpush3.msra.mxu0 %v4723_v43  ;;  %4410 = vmatprep.mubr.msk.f32.mxu0 %vm4809_vm10, %v4808_v53 }
 0x59b   :  { %4418 = vmatprep.subr.mxu0 %v4808_v53 }
 0x59c   :  { %v2401_v50 = vpop.trf.xlu0  ;;  %v2611_v54 = vpop.trf.xlu1 }
 0x59d   :  { %4406 = vmatmul.mubr.msk.f32.vlgmr.msra.gmra.mxu1 %vm1573_vm8, %v2401_v50 }
 0x59e   :  { %4414 = vmatpush3.msra.mxu1 %v4724_v59  ;;  %4415 = vmatprep.mubr.msk.f32.mxu1 %vm4809_vm10, %v4808_v53 }
 0x59f   :  { %4423 = vmatprep.subr.mxu1 %v4808_v53 }
 0x5a0   :  { %v2506_v35 = vpop.trf.xlu0  ;;  %v2821_v19 = vpop.trf.xlu1 }
 0x5a1   :  { %4411 = vmatmul.mubr.msk.f32.vlgmr.msra.gmra.mxu0 %vm1573_vm8, %v2506_v35  ;;  %4416 = vmatmul.mubr.msk.f32.vlgmr.msra.gmra.mxu1 %vm1573_vm8, %v2611_v54 }
 0x5a2   :  { %4419 = vmatpush3.msra.mxu0 %v4725_v42  ;;  %4424 = vmatpush3.msra.mxu1 %v4726_v22 }
 0x5a3   :  { %4420 = vmatprep.mubr.msk.f32.mxu0 %vm4809_vm10, %v4808_v53  ;;  %4425 = vmatprep.mubr.msk.f32.mxu1 %vm4809_vm10, %v4808_v53 }
 0x5a4   :  { %4428 = vmatprep.subr.mxu0 %v4808_v53  ;;  %4433 = vmatprep.subr.mxu1 %v4808_v53  ;;  %v2716_v58 = vpop.trf.xlu0  ;;  %v3031_v26 = vpop.trf.xlu1 }
 0x5a5   :  { %4421 = vmatmul.mubr.msk.f32.vlgmr.msra.gmra.mxu0 %vm1573_vm8, %v2716_v58  ;;  %4426 = vmatmul.mubr.msk.f32.vlgmr.msra.gmra.mxu1 %vm1573_vm8, %v2821_v19 }
 0x5a6   :  { %4429 = vmatpush3.msra.mxu0 %v4727_v46  ;;  %4434 = vmatpush3.msra.mxu1 %v4728_v61 }
 0x5a7   :  { %4430 = vmatprep.mubr.msk.f32.mxu0 %vm4809_vm10, %v4808_v53  ;;  %4435 = vmatprep.mubr.msk.f32.mxu1 %vm4809_vm10, %v4808_v53 }
 0x5a8   :  { %4438 = vmatprep.subr.mxu0 %v4808_v53  ;;  %4443 = vmatprep.subr.mxu1 %v4808_v53  ;;  %v2926_v31 = vpop.trf.xlu0  ;;  %v3241_v63 = vpop.trf.xlu1 }
 0x5a9   :  { %4431 = vmatmul.mubr.msk.f32.vlgmr.msra.gmra.mxu0 %vm1573_vm8, %v2926_v31  ;;  %4436 = vmatmul.mubr.msk.f32.vlgmr.msra.gmra.mxu1 %vm1573_vm8, %v3031_v26 }
 0x5aa   :  { %4439 = vmatpush3.msra.mxu0 %v4729_v51  ;;  %4444 = vmatpush3.msra.mxu1 %v4730_v41 }
 0x5ab   :  { %4440 = vmatprep.mubr.msk.f32.mxu0 %vm4809_vm10, %v4808_v53  ;;  %4445 = vmatprep.mubr.msk.f32.mxu1 %vm4809_vm10, %v4808_v53 }
 0x5ac   :  { %4448 = vmatprep.subr.mxu0 %v4808_v53  ;;  %4453 = vmatprep.subr.mxu1 %v4808_v53  ;;  %v3136_v34 = vpop.trf.xlu0  ;;  %v3451_v25 = vpop.trf.xlu1 }
 0x5ad   :  { %4441 = vmatmul.mubr.msk.f32.vlgmr.msra.gmra.mxu0 %vm1573_vm8, %v3136_v34  ;;  %4446 = vmatmul.mubr.msk.f32.vlgmr.msra.gmra.mxu1 %vm1573_vm8, %v3241_v63 }
 0x5ae   :  { %4449 = vmatpush3.msra.mxu0 %v4731_v3  ;;  %4454 = vmatpush3.msra.mxu1 %v4732_v18 }
 0x5af   :  { %4450 = vmatprep.mubr.msk.f32.mxu0 %vm4809_vm10, %v4808_v53  ;;  %4455 = vmatprep.mubr.msk.f32.mxu1 %vm4809_vm10, %v4808_v53 }
 0x5b0   :  { %4458 = vmatprep.subr.mxu0 %v4808_v53  ;;  %4463 = vmatprep.subr.mxu1 %v4808_v53  ;;  %v3346_v30 = vpop.trf.xlu0  ;;  %v3661_v6 = vpop.trf.xlu1 }
 0x5b1   :  { %4451 = vmatmul.mubr.msk.f32.vlgmr.msra.gmra.mxu0 %vm1573_vm8, %v3346_v30  ;;  %4456 = vmatmul.mubr.msk.f32.vlgmr.msra.gmra.mxu1 %vm1573_vm8, %v3451_v25 }
 0x5b2   :  { %4459 = vmatpush3.msra.mxu0 %v4733_v17  ;;  %4464 = vmatpush3.msra.mxu1 %v4734_v38 }
 0x5b3   :  { %4460 = vmatprep.mubr.msk.f32.mxu0 %vm4809_vm10, %v4808_v53  ;;  %4465 = vmatprep.mubr.msk.f32.mxu1 %vm4809_vm10, %v4808_v53 }
 0x5b4   :  { %v3556_v37 = vpop.trf.xlu0 }
 0x5b5   :  { %4461 = vmatmul.mubr.msk.f32.vlgmr.msra.gmra.mxu0 %vm1573_vm8, %v3556_v37  ;;  %4466 = vmatmul.mubr.msk.f32.vlgmr.msra.gmra.mxu1 %vm1573_vm8, %v3661_v6 }
 0x653   :  { %v2171_v4 = vpop.f32.mrf.mxu0 }
 0x654   :  { %v6005_v48 = vadd.f32 %v6002_v33, %v2171_v4 }
 0x655   :  { %v4392_v21 = vpop.f32.mrf.mxu0  ;;  %v2276_v39 = vpop.f32.mrf.mxu1 }
 0x656   :  { %v3768_v53 = vsel %vm3767_vm11, %v6005_v48, 0.0  ;;  %v6010_v27 = vadd.f32 %v6002_v33, %v2276_v39 }
 0x657   :  { %3769 = vadd.xlane.f32.xlu0 %v3768_v53  ;;  %v4397_v29 = vpop.f32.mrf.mxu1 }
 0x658   :  { %v3771_v55 = vsel %vm3767_vm11, %v6010_v27, 0.0 }
 0x659   :  { %3772 = vadd.xlane.f32.xlu1 %v3771_v55  ;;  %v2381_v2 = vpop.f32.mrf.mxu0 }
 0x65a   :  { %v6015_v14 = vadd.f32 %v6002_v33, %v2381_v2 }
 0x65b   :  { %v4402_v60 = vpop.f32.mrf.mxu0 }
 0x65c   :  { %v3774_v11 = vsel %vm3767_vm11, %v6015_v14, 0.0 }
 0x65d   :  { %3775 = vadd.xlane.f32.xlu1 %v3774_v11  ;;  %v2486_v23 = vpop.f32.mrf.mxu1 }
 0x65e   :  { %v6020_v8 = vadd.f32 %v6002_v33, %v2486_v23 }
 0x65f   :  { %v4407_v10 = vpop.f32.mrf.mxu1 }
 0x660   :  { %v3777_v1 = vsel %vm3767_vm11, %v6020_v8, 0.0 }
 0x661   :  { %3778 = vadd.xlane.f32.xlu1 %v3777_v1  ;;  %v2591_v24 = vpop.f32.mrf.mxu0  ;;  %v2696_v62 = vpop.f32.mrf.mxu1 }
 0x662   :  { %v6025_v40 = vadd.f32 %v6002_v33, %v2591_v24  ;;  %v6028_v52 = vadd.f32 %v6002_v33, %v2696_v62 }
 0x663   :  { %v4412_v13 = vpop.f32.mrf.mxu0  ;;  %v4417_v16 = vpop.f32.mrf.mxu1 }
 0x664   :  { %v3783_v49 = vsel %vm3767_vm11, %v6028_v52, 0.0  ;;  %v3780_v45 = vsel %vm3767_vm11, %v6025_v40, 0.0 }
 0x665   :  { %3784 = vadd.xlane.f32.xlu1 %v3783_v49  ;;  %v2906_v15 = vpop.f32.mrf.mxu1  ;;  %3781 = vadd.xlane.f32.xlu0 %v3780_v45  ;;  %v2801_v28 = vpop.f32.mrf.mxu0 }
 0x666   :  { %v6035_v9 = vadd.f32 %v6002_v33, %v2906_v15  ;;  %v6038_v57 = vadd.f32 %v6002_v33, %v2801_v28 }
 0x667   :  { %v4422_v5 = vpop.f32.mrf.mxu0  ;;  %v4427_v56 = vpop.f32.mrf.mxu1 }
 0x668   :  { %v3789_v36 = vsel %vm3767_vm11, %v6035_v9, 0.0  ;;  %v3786_v47 = vsel %vm3767_vm11, %v6038_v57, 0.0 }
 0x669   :  { %3790 = vadd.xlane.f32.xlu1 %v3789_v36  ;;  %v3116_v12 = vpop.f32.mrf.mxu1  ;;  %3787 = vadd.xlane.f32.xlu0 %v3786_v47  ;;  %v3011_v44 = vpop.f32.mrf.mxu0 }
 0x66a   :  { %v6045_v0 = vadd.f32 %v6002_v33, %v3116_v12  ;;  %v6048_v43 = vadd.f32 %v6002_v33, %v3011_v44 }
 0x66b   :  { %v4432_v50 = vpop.f32.mrf.mxu0  ;;  %v4437_v54 = vpop.f32.mrf.mxu1 }
 0x66c   :  { %v3795_v59 = vsel %vm3767_vm11, %v6045_v0, 0.0  ;;  %v3792_v35 = vsel %vm3767_vm11, %v6048_v43, 0.0 }
 0x66d   :  { %3796 = vadd.xlane.f32.xlu1 %v3795_v59  ;;  %v3326_v19 = vpop.f32.mrf.mxu1  ;;  %3793 = vadd.xlane.f32.xlu0 %v3792_v35  ;;  %v3221_v42 = vpop.f32.mrf.mxu0 }
 0x66e   :  { %v6055_v22 = vadd.f32 %v6002_v33, %v3326_v19  ;;  %v6058_v58 = vadd.f32 %v6002_v33, %v3221_v42 }
 0x66f   :  { %v4442_v26 = vpop.f32.mrf.mxu0  ;;  %v4447_v46 = vpop.f32.mrf.mxu1 }
 0x670   :  { %v3801_v61 = vsel %vm3767_vm11, %v6055_v22, 0.0  ;;  %v3798_v31 = vsel %vm3767_vm11, %v6058_v58, 0.0 }
 0x671   :  { %3802 = vadd.xlane.f32.xlu1 %v3801_v61  ;;  %v3536_v63 = vpop.f32.mrf.mxu1  ;;  %3799 = vadd.xlane.f32.xlu0 %v3798_v31  ;;  %v3431_v51 = vpop.f32.mrf.mxu0 }
 0x672   :  { %v6065_v41 = vadd.f32 %v6002_v33, %v3536_v63  ;;  %v6068_v34 = vadd.f32 %v6002_v33, %v3431_v51 }
 0x673   :  { %v4452_v25 = vpop.f32.mrf.mxu0  ;;  %v4457_v3 = vpop.f32.mrf.mxu1 }
 0x674   :  { %v3807_v18 = vsel %vm3767_vm11, %v6065_v41, 0.0  ;;  %v3804_v30 = vsel %vm3767_vm11, %v6068_v34, 0.0 }
 0x675   :  { %3808 = vadd.xlane.f32.xlu1 %v3807_v18  ;;  %v3746_v17 = vpop.f32.mrf.mxu1  ;;  %3805 = vadd.xlane.f32.xlu0 %v3804_v30  ;;  %v3641_v38 = vpop.f32.mrf.mxu0 }
 0x676   :  { %v6075_v6 = vadd.f32 %v6002_v33, %v3746_v17  ;;  %v6078_v37 = vadd.f32 %v6002_v33, %v3641_v38 }
 0x677   :  { %v4462_v4 = vpop.f32.mrf.mxu0  ;;  %v4467_v21 = vpop.f32.mrf.mxu1 }
 0x678   :  { %v3813_v39 = vsel %vm3767_vm11, %v6075_v6, 0.0  ;;  %v3810_v53 = vsel %vm3767_vm11, %v6078_v37, 0.0 }
 0x679   :  { %3814 = vadd.xlane.f32.xlu1 %v3813_v39  ;;  %3811 = vadd.xlane.f32.xlu0 %v3810_v53 }
 0x6e0   :  { %v3770_v29 = vpop.xlane.xlu0 %3769 }
 0x6e1   :  { %v3816_v55 = vmul.f32 0.03125, %v3770_v29 }
 0x6e2   :  { %v3773_v2 = vpop.xlane.xlu1 %3772 }
 0x6e3   :  { %v6085_v60 = vsub.f32 %v6005_v48, %v3816_v55  ;;  %v3817_v11 = vmul.f32 0.03125, %v3773_v2 }
 0x6e5   :  { %v3848_v33 = vmul.f32 %v6085_v60, %v6085_v60  ;;  %v6090_v23 = vsub.f32 %v6010_v27, %v3817_v11 }
 0x6e6   :  { %v3776_v10 = vpop.xlane.xlu1 %3775 }
 0x6e7   :  { %v3864_v1 = vsel %vm3767_vm11, %v3848_v33, 0.0  ;;  %v3818_v24 = vmul.f32 0.03125, %v3776_v10  ;;  %v3849_v62 = vmul.f32 %v6090_v23, %v6090_v23 }
 0x6e8   :  { %3865 = vadd.xlane.f32.xlu0 %v3864_v1 }
 0x6e9   :  { %v6096_v13 = vsub.f32 %v6015_v14, %v3818_v24  ;;  %v3867_v48 = vsel %vm3767_vm11, %v3849_v62, 0.0 }
 0x6ea   :  { %v3779_v16 = vpop.xlane.xlu1 %3778  ;;  %3868 = vadd.xlane.f32.xlu1 %v3867_v48 }
 0x6eb   :  { %v3819_v49 = vmul.f32 0.03125, %v3779_v16  ;;  %v3850_v27 = vmul.f32 %v6096_v13, %v6096_v13 }
 0x6ed   :  { %v6102_v45 = vsub.f32 %v6020_v8, %v3819_v49  ;;  %v3870_v15 = vsel %vm3767_vm11, %v3850_v27, 0.0 }
 0x6ee   :  { %v3785_v28 = vpop.xlane.xlu1 %3784  ;;  %3871 = vadd.xlane.f32.xlu0 %v3870_v15  ;;  %v3782_v5 = vpop.xlane.xlu0 %3781 }
 0x6ef   :  { %v3821_v56 = vmul.f32 0.03125, %v3785_v28  ;;  %v3820_v36 = vmul.f32 0.03125, %v3782_v5  ;;  %v3851_v14 = vmul.f32 %v6102_v45, %v6102_v45 }
 0x6f1   :  { %v6108_v47 = vsub.f32 %v6028_v52, %v3821_v56  ;;  %v6111_v12 = vsub.f32 %v6025_v40, %v3820_v36  ;;  %v3873_v44 = vsel %vm3767_vm11, %v3851_v14, 0.0 }
 0x6f2   :  { %v3791_v8 = vpop.xlane.xlu1 %3790  ;;  %3874 = vadd.xlane.f32.xlu1 %v3873_v44  ;;  %v3788_v50 = vpop.xlane.xlu0 %3787 }
 0x6f3   :  { %v3823_v54 = vmul.f32 0.03125, %v3791_v8  ;;  %v3822_v59 = vmul.f32 0.03125, %v3788_v50  ;;  %v3853_v35 = vmul.f32 %v6108_v47, %v6108_v47  ;;  %v3852_v19 = vmul.f32 %v6111_v12, %v6111_v12 }
 0x6f5   :  { %v6119_v42 = vsub.f32 %v6035_v9, %v3823_v54  ;;  %v6122_v52 = vsub.f32 %v6038_v57, %v3822_v59  ;;  %v3879_v40 = vsel %vm3767_vm11, %v3853_v35, 0.0  ;;  %v3876_v26 = vsel %vm3767_vm11, %v3852_v19, 0.0 }
 0x6f6   :  { %v3797_v46 = vpop.xlane.xlu1 %3796  ;;  %3880 = vadd.xlane.f32.xlu1 %v3879_v40  ;;  %3877 = vadd.xlane.f32.xlu0 %v3876_v26  ;;  %v3794_v61 = vpop.xlane.xlu0 %3793 }
 0x6f7   :  { %v3825_v31 = vmul.f32 0.03125, %v3797_v46  ;;  %v3824_v63 = vmul.f32 0.03125, %v3794_v61  ;;  %v3855_v51 = vmul.f32 %v6119_v42, %v6119_v42  ;;  %v3854_v9 = vmul.f32 %v6122_v52, %v6122_v52 }
 0x6f9   :  { %v6131_v25 = vsub.f32 %v6045_v0, %v3825_v31  ;;  %v6134_v57 = vsub.f32 %v6048_v43, %v3824_v63  ;;  %v3885_v3 = vsel %vm3767_vm11, %v3855_v51, 0.0  ;;  %v3882_v18 = vsel %vm3767_vm11, %v3854_v9, 0.0 }
 0x6fa   :  { %v3803_v30 = vpop.xlane.xlu1 %3802  ;;  %3886 = vadd.xlane.f32.xlu1 %v3885_v3  ;;  %3883 = vadd.xlane.f32.xlu0 %v3882_v18  ;;  %v3800_v17 = vpop.xlane.xlu0 %3799 }
 0x6fb   :  { %v3827_v38 = vmul.f32 0.03125, %v3803_v30  ;;  %v3826_v4 = vmul.f32 0.03125, %v3800_v17  ;;  %v3857_v21 = vmul.f32 %v6131_v25, %v6131_v25  ;;  %v3856_v0 = vmul.f32 %v6134_v57, %v6134_v57 }
 0x6fd   :  { %v6143_v39 = vsub.f32 %v6055_v22, %v3827_v38  ;;  %v6146_v43 = vsub.f32 %v6058_v58, %v3826_v4  ;;  %v3891_v53 = vsel %vm3767_vm11, %v3857_v21, 0.0  ;;  %v3888_v29 = vsel %vm3767_vm11, %v3856_v0, 0.0 }
 0x6fe   :  { %v3809_v55 = vpop.xlane.xlu1 %3808  ;;  %3892 = vadd.xlane.f32.xlu1 %v3891_v53  ;;  %3889 = vadd.xlane.f32.xlu0 %v3888_v29  ;;  %v3806_v2 = vpop.xlane.xlu0 %3805 }
 0x6ff   :  { %v3829_v11 = vmul.f32 0.03125, %v3809_v55  ;;  %v3828_v33 = vmul.f32 0.03125, %v3806_v2  ;;  %v3859_v10 = vmul.f32 %v6143_v39, %v6143_v39  ;;  %v3858_v22 = vmul.f32 %v6146_v43, %v6146_v43 }
 0x701   :  { %v6155_v1 = vsub.f32 %v6065_v41, %v3829_v11  ;;  %v6158_v58 = vsub.f32 %v6068_v34, %v3828_v33  ;;  %v3897_v24 = vsel %vm3767_vm11, %v3859_v10, 0.0  ;;  %v3894_v62 = vsel %vm3767_vm11, %v3858_v22, 0.0 }
 0x702   :  { %3898 = vadd.xlane.f32.xlu1 %v3897_v24  ;;  %v3815_v48 = vpop.xlane.xlu1 %3814  ;;  %3895 = vadd.xlane.f32.xlu0 %v3894_v62  ;;  %v3812_v16 = vpop.xlane.xlu0 %3811 }
 0x703   :  { %v3831_v49 = vmul.f32 0.03125, %v3815_v48  ;;  %v3830_v27 = vmul.f32 0.03125, %v3812_v16  ;;  %v3861_v15 = vmul.f32 %v6155_v1, %v6155_v1  ;;  %v3860_v41 = vmul.f32 %v6158_v58, %v6158_v58  ;;  %v4735_v48 = vld [vmem:[#allocation5] sm:$0xff] }
 0x704   :  { %v6181_v16 = vrot.slane %v4735_v48, %v5700_v7  ;;  %v6188_v7 = vrot.slane %v4735_v48, %v5705_v32 }
 0x705   :  { %v6167_v28 = vsub.f32 %v6075_v6, %v3831_v49  ;;  %v6170_v34 = vsub.f32 %v6078_v37, %v3830_v27  ;;  %v3903_v5 = vsel %vm3767_vm11, %v3861_v15, 0.0  ;;  %v3900_v56 = vsel %vm3767_vm11, %v3860_v41, 0.0 }
 0x706   :  { %3904 = vadd.xlane.f32.xlu1 %v3903_v5  ;;  %3901 = vadd.xlane.f32.xlu0 %v3900_v56 }
 0x707   :  { %v3863_v36 = vmul.f32 %v6167_v28, %v6167_v28  ;;  %v3862_v14 = vmul.f32 %v6170_v34, %v6170_v34 }
 0x709   :  { %v3909_v44 = vsel %vm3767_vm11, %v3863_v36, 0.0  ;;  %v3906_v6 = vsel %vm3767_vm11, %v3862_v14, 0.0 }
 0x70a   :  { %3910 = vadd.xlane.f32.xlu1 %v3909_v44  ;;  %3907 = vadd.xlane.f32.xlu0 %v3906_v6 }
 0x771   :  { %v3866_v37 = vpop.xlane.xlu0 %3865 }
 0x772   :  { %v3912_v54 = vmul.f32 0.03125, %v3866_v37 }
 0x773   :  { %v3869_v8 = vpop.xlane.xlu1 %3868 }
 0x774   :  { %v3913_v50 = vmul.f32 0.03125, %v3869_v8  ;;  %v3928_v40 = vadd.f32 1e-12, %v3912_v54  ;;  %v4810_v54 = vmov 1983009808  }
 0x776   :  { %v3929_v59 = vadd.f32 1e-12, %v3913_v50 }
 0x777   :  { %v3872_v35 = vpop.xlane.xlu0 %3871 }
 0x778   :  { %v3914_v19 = vmul.f32 0.03125, %v3872_v35  ;;  %4680 = vrsqrt.f32 %v3929_v59  ;;  %v4018_v59 = vunpack.c.l.s4 %v4810_v54 }
 0x77a   :  { %v3930_v26 = vadd.f32 1e-12, %v3914_v19 }
 0x77b   :  { %v3875_v46 = vpop.xlane.xlu1 %3874 }
 0x77c   :  { %4682 = vrsqrt.f32 %v3930_v26  ;;  %v3915_v61 = vmul.f32 0.03125, %v3875_v46 }
 0x77d   :  { %4684 = vrsqrt.f32 %v3928_v40 }
 0x77e   :  { %v3931_v31 = vadd.f32 1e-12, %v3915_v61 }
 0x77f   :  { %v3881_v63 = vpop.xlane.xlu1 %3880  ;;  %v3878_v51 = vpop.xlane.xlu0 %3877 }
 0x780   :  { %4686 = vrsqrt.f32 %v3931_v31  ;;  %v3917_v9 = vmul.f32 0.03125, %v3881_v63  ;;  %v3916_v3 = vmul.f32 0.03125, %v3878_v51 }
 0x782   :  { %v3933_v18 = vadd.f32 1e-12, %v3917_v9  ;;  %v3932_v30 = vadd.f32 1e-12, %v3916_v3 }
 0x783   :  { %v3887_v17 = vpop.xlane.xlu1 %3886  ;;  %v3884_v38 = vpop.xlane.xlu0 %3883 }
 0x784   :  { %4688 = vrsqrt.f32 %v3933_v18  ;;  %v3919_v4 = vmul.f32 0.03125, %v3887_v17  ;;  %v3918_v21 = vmul.f32 0.03125, %v3884_v38  ;;  %v4019_v18 = vunpack.c.0.s8 %v4018_v59 }
 0x785   :  { %4690 = vrsqrt.f32 %v3932_v30  ;;  %v4681_v2 = vpop.eup %4680 }
 0x786   :  { %v3935_v0 = vadd.f32 1e-12, %v3919_v4  ;;  %v3934_v53 = vadd.f32 1e-12, %v3918_v21  ;;  %v3961_v49 = vmul.f32 %v4681_v2, %v6090_v23 }
 0x787   :  { %v3893_v29 = vpop.xlane.xlu1 %3892  ;;  %v3890_v55 = vpop.xlane.xlu0 %3889 }
 0x788   :  { %4692 = vrsqrt.f32 %v3935_v0  ;;  %v3921_v11 = vmul.f32 0.03125, %v3893_v29  ;;  %v3920_v33 = vmul.f32 0.03125, %v3890_v55  ;;  %v3981_v23 = vmul.f32 %v6181_v16, %v3961_v49 }
 0x789   :  { %v4683_v10 = vpop.eup %4682  ;;  %4694 = vrsqrt.f32 %v3934_v53  ;;  %v4811_v0 = vmov 1934713408  }
 0x78a   :  { %v4685_v22 = vpop.eup %4684  ;;  %v3937_v24 = vadd.f32 1e-12, %v3921_v11  ;;  %v3936_v62 = vadd.f32 1e-12, %v3920_v33  ;;  %v3962_v27 = vmul.f32 %v4683_v10, %v6096_v13  ;;  %v4001_v3 = vadd.f32 %v6188_v7, %v3981_v23 }
 0x78b   :  { %v3899_v15 = vpop.xlane.xlu1 %3898  ;;  %v3896_v41 = vpop.xlane.xlu0 %3895  ;;  %v3960_v14 = vmul.f32 %v4685_v22, %v6085_v60  ;;  %v4051_v53 = vunpack.c.l.s4 %v4811_v0 }
 0x78c   :  { %4696 = vrsqrt.f32 %v3937_v24  ;;  %v3923_v5 = vmul.f32 0.03125, %v3899_v15  ;;  %v3922_v56 = vmul.f32 0.03125, %v3896_v41  ;;  %v3982_v13 = vmul.f32 %v6181_v16, %v3962_v27 }
 0x78d   :  { %v4687_v36 = vpop.eup %4686  ;;  %4698 = vrsqrt.f32 %v3936_v62  ;;  %v6206_v62 = vsub.s32 %v4019_v18, %v5057_v20  ;;  %v4052_v27 = vunpack.c.0.s8 %v4051_v53 }
 0x78e   :  { %v3963_v44 = vmul.f32 %v4687_v36, %v6102_v45  ;;  %v3939_v6 = vadd.f32 1e-12, %v3923_v5  ;;  %v3938_v37 = vadd.f32 1e-12, %v3922_v56  ;;  %v3980_v45 = vmul.f32 %v6181_v16, %v3960_v14 }
 0x78f   :  { %v3905_v8 = vpop.xlane.xlu1 %3904  ;;  %v3902_v50 = vpop.xlane.xlu0 %3901  ;;  %v4002_v38 = vadd.f32 %v6188_v7, %v3982_v13  ;;  %v4055_v13 = vsub.s32 %v4052_v27, %v5057_v20 }
 0x790   :  { %v3983_v35 = vmul.f32 %v6181_v16, %v3963_v44  ;;  %4700 = vrsqrt.f32 %v3939_v6  ;;  %v3925_v60 = vmul.f32 0.03125, %v3905_v8  ;;  %v3924_v19 = vmul.f32 0.03125, %v3902_v50 }
 0x791   :  { %v4689_v40 = vpop.eup %4688  ;;  %4702 = vrsqrt.f32 %v3938_v37 }
 0x792   :  { %v4691_v26 = vpop.eup %4690  ;;  %v3965_v32 = vmul.f32 %v4689_v40, %v6108_v47  ;;  %v3941_v46 = vadd.f32 1e-12, %v3925_v60  ;;  %v3940_v61 = vadd.f32 1e-12, %v3924_v19  ;;  %v4003_v31 = vadd.f32 %v6188_v7, %v3983_v35 }
 0x793   :  { %v3964_v63 = vmul.f32 %v4691_v26, %v6111_v12  ;;  %v3911_v51 = vpop.xlane.xlu1 %3910  ;;  %v3908_v9 = vpop.xlane.xlu0 %3907  ;;  %v4000_v47 = vadd.f32 %v6188_v7, %v3980_v45 }
 0x794   :  { %4704 = vrsqrt.f32 %v3941_v46  ;;  %v3927_v30 = vmul.f32 0.03125, %v3911_v51  ;;  %v3926_v17 = vmul.f32 0.03125, %v3908_v9  ;;  %v3985_v21 = vmul.f32 %v6181_v16, %v3965_v32 }
 0x795   :  { %v4693_v4 = vpop.eup %4692  ;;  %4706 = vrsqrt.f32 %v3940_v61  ;;  %v4024_v11 = vcombine.low %v4001_v3, %v4003_v31  ;;  %v3984_v33 = vmul.f32 %v6181_v16, %v3964_v63  ;;  %v4016_v24 = vcombine.low %v4000_v47, %v4002_v38 }
 0x796   :  { %v4695_v29 = vpop.eup %4694  ;;  %v3967_v12 = vmul.f32 %v4693_v4, %v6119_v42  ;;  %v3943_v55 = vadd.f32 1e-12, %v3927_v30  ;;  %v3942_v2 = vadd.f32 1e-12, %v3926_v17  ;;  %v4005_v15 = vadd.f32 %v6188_v7, %v3985_v21 }
 0x797   :  { %v3966_v10 = vmul.f32 %v4695_v29, %v6122_v52  ;;  %v4031_v5 = vrot.slane %v4024_v11, %v6206_v62  ;;  %v4004_v52 = vadd.f32 %v6188_v7, %v3984_v33  ;;  %v4023_v14 = vrot.slane %v4016_v24, %v6206_v62 }
 0x798   :  { %v3987_v22 = vmul.f32 %v6181_v16, %v3967_v12  ;;  %4708 = vrsqrt.f32 %v3943_v55 }
 0x799   :  { %v4697_v48 = vpop.eup %4696  ;;  %v3986_v49 = vmul.f32 %v6181_v16, %v3966_v10  ;;  %4710 = vrsqrt.f32 %v3942_v2  ;;  %v4049_v59 = vcombine.high %v4023_v14, %v4031_v5  ;;  %v4048_v35 = vcombine.low %v4023_v14, %v4031_v5 }
 0x79a   :  { %v4699_v42 = vpop.eup %4698  ;;  %v4007_v41 = vadd.f32 %v6188_v7, %v3987_v22  ;;  %v3969_v36 = vmul.f32 %v4697_v48, %v6131_v25 }
 0x79b   :  { %v4006_v56 = vadd.f32 %v6188_v7, %v3986_v49  ;;  %v3968_v37 = vmul.f32 %v4699_v42, %v6134_v57  ;;  %v4063_v61 = vrot.slane %v4049_v59, %v4055_v13  ;;  %v4056_v31 = vrot.slane %v4048_v35, %v4055_v13 }
 0x79c   :  { %v4040_v44 = vcombine.low %v4005_v15, %v4007_v41  ;;  %v3989_v19 = vmul.f32 %v6181_v16, %v3969_v36 }
 0x79d   :  { %v4701_v6 = vpop.eup %4700  ;;  %v4032_v23 = vcombine.low %v4004_v52, %v4006_v56  ;;  %v3988_v57 = vmul.f32 %v6181_v16, %v3968_v37 }
 0x79e   :  { %v4703_v8 = vpop.eup %4702  ;;  %v3971_v50 = vmul.f32 %v4701_v6, %v6143_v39  ;;  %v4047_v54 = vrot.slane %v4040_v44, %v6206_v62  ;;  %v4009_v18 = vadd.f32 %v6188_v7, %v3989_v19 }
 0x79f   :  { %v3970_v60 = vmul.f32 %v4703_v8, %v6146_v43  ;;  %v4039_v25 = vrot.slane %v4032_v23, %v6206_v62  ;;  %v4008_v4 = vadd.f32 %v6188_v7, %v3988_v57 }
 0x7a0   :  { %v3991_v40 = vmul.f32 %v6181_v16, %v3971_v50 }
 0x7a1   :  { %v4705_v45 = vpop.eup %4704  ;;  %v3990_v20 = vmul.f32 %v6181_v16, %v3970_v60  ;;  %v4065_v26 = vcombine.high %v4039_v25, %v4047_v54  ;;  %v4064_v32 = vcombine.low %v4039_v25, %v4047_v54 }
 0x7a2   :  { %v4707_v39 = vpop.eup %4706  ;;  %v3973_v46 = vmul.f32 %v4705_v45, %v6155_v1  ;;  %v4011_v43 = vadd.f32 %v6188_v7, %v3991_v40 }
 0x7a3   :  { %v3972_v63 = vmul.f32 %v4707_v39, %v6158_v58  ;;  %v4079_v51 = vrot.slane %v4065_v26, %v4055_v13  ;;  %v4072_v9 = vrot.slane %v4064_v32, %v4055_v13  ;;  %v4010_v3 = vadd.f32 %v6188_v7, %v3990_v20 }
 0x7a4   :  { %v3993_v1 = vmul.f32 %v6181_v16, %v3973_v46  ;;  %v4092_v0 = vcombine.low %v4009_v18, %v4011_v43 }
 0x7a5   :  { %v4709_v30 = vpop.eup %4708  ;;  %v4082_v17 = vcombine.low %v4063_v61, %v4079_v51  ;;  %v4081_v38 = vcombine.high %v4056_v31, %v4072_v9  ;;  %v3992_v53 = vmul.f32 %v6181_v16, %v3972_v63  ;;  %v4084_v29 = vcombine.low %v4008_v4, %v4010_v3 }
 0x7a6   :  { %v4711_v21 = vpop.eup %4710  ;;  %v3975_v47 = vmul.f32 %v4709_v30, %v6167_v28  ;;  %v4080_v55 = vcombine.low %v4056_v31, %v4072_v9  ;;  %v4013_v11 = vadd.f32 %v6188_v7, %v3993_v1  ;;  %v4099_v22 = vrot.slane %v4092_v0, %v6206_v62 }
 0x7a7   :  { %v3974_v58 = vmul.f32 %v4711_v21, %v6170_v34  ;;  %4162 = vrot.lane.b32.xlu1 %v4082_v17, %s4812_s5  ;;  %4154 = vrot.lane.b32.xlu0 %v4081_v38, %s4813_s26  ;;  %v4012_v28 = vadd.f32 %v6188_v7, %v3992_v53  ;;  %v4091_v34 = vrot.slane %v4084_v29, %v6206_v62 }
 0x7a8   :  { %v3995_v12 = vmul.f32 %v6181_v16, %v3975_v47  ;;  %v4083_v37 = vcombine.high %v4063_v61, %v4079_v51 }
 0x7a9   :  { %v3994_v2 = vmul.f32 %v6181_v16, %v3974_v58  ;;  %v4117_v42 = vcombine.high %v4091_v34, %v4099_v22  ;;  %v4116_v16 = vcombine.low %v4091_v34, %v4099_v22 }
 0x7aa   :  { %v4015_v33 = vadd.f32 %v6188_v7, %v3995_v12 }
 0x7ab   :  { %v4014_v10 = vadd.f32 %v6188_v7, %v3994_v2  ;;  %v4131_v5 = vrot.slane %v4117_v42, %v4055_v13  ;;  %v4124_v56 = vrot.slane %v4116_v16, %v4055_v13 }
 0x7ac   :  { %v4108_v24 = vcombine.low %v4013_v11, %v4015_v33 }
 0x7ad   :  { %v4100_v48 = vcombine.low %v4012_v28, %v4014_v10 }
 0x7ae   :  { %v4115_v49 = vrot.slane %v4108_v24, %v6206_v62 }
 0x7af   :  { %v4107_v27 = vrot.slane %v4100_v48, %v6206_v62 }
 0x7b1   :  { %v4133_v15 = vcombine.high %v4107_v27, %v4115_v49  ;;  %v4132_v41 = vcombine.low %v4107_v27, %v4115_v49 }
 0x7b3   :  { %v4147_v52 = vrot.slane %v4133_v15, %v4055_v13  ;;  %v4140_v36 = vrot.slane %v4132_v41, %v4055_v13 }
 0x7b5   :  { %v4150_v14 = vcombine.low %v4131_v5, %v4147_v52  ;;  %v4149_v7 = vcombine.high %v4124_v56, %v4140_v36  ;;  %v4148_v44 = vcombine.low %v4124_v56, %v4140_v36  ;;  %v4151_v6 = vcombine.high %v4131_v5, %v4147_v52 }
 0x7b7   :  { %4164 = vrot.lane.b32.xlu0 %v4150_v14, %s4812_s5  ;;  %4156 = vrot.lane.b32.xlu1 %v4149_v7, %s4813_s26 }
 0x7bb   :  { %4172 = vrot.lane.b32.xlu0 %v4151_v6, %s4814_s27  ;;  %4170 = vrot.lane.b32.xlu1 %v4083_v37, %s4814_s27 }
 0x819   :  { %v4163_v23 = vpop.permute.xlu1 %4162  ;;  %v4155_v62 = vpop.permute.xlu0 %4154 }
 0x81a   :  { %v4176_v54 = vsel %vm71_vm0, %v4080_v55, %v4155_v62 }
 0x81b   :  { %v4179_v60 = vsel %vm4178_vm12, %v4176_v54, %v4163_v23 }
 0x829   :  { %v4157_v8 = vpop.permute.xlu1 %4156  ;;  %v4165_v50 = vpop.permute.xlu0 %4164 }
 0x82a   :  { %v4177_v59 = vsel %vm71_vm0, %v4148_v44, %v4157_v8 }
 0x82b   :  { %v4180_v13 = vsel %vm4178_vm12, %v4177_v59, %v4165_v50 }
 0x82d   :  { %v4171_v35 = vpop.permute.xlu1 %4170  ;;  %v4173_v25 = vpop.permute.xlu0 %4172 }
 0x82e   :  { %v4182_v19 = vsel %vm4181_vm13, %v4179_v60, %v4171_v35  ;;  %v4183_v40 = vsel %vm4181_vm13, %v4180_v13, %v4173_v25 }
 0x82f   :  { %4184 = vst [vmem:[#allocation7] sm:$0xff] %v4182_v19  ;;  %4185 = vst [vmem:[#allocation7 + $0x8] sm:$0xff] %v4183_v40 }
 0x830   :  { %4787 = shalt.err (!%p4784_p0)
}
 0x831   :  { %4197 = dma.vmem_to_hbm [thread:$0]  %s4192_s29, 256, %s6260_s6, [#allocation4], %s4803_s24, %s4803_s24, %s4804_s25  }
 0x832   :  { %4800 = dma.done.wait [#allocation4], 256  }
 0x833   :  { %4801 = vsyncadd [#allocation4], 4294967040 }
 0x834   :  { %4201 = vsyncpa [#allocation3], 1 }
 0x835   :  { %4202 = vsyncpa [#allocation6], 1 }
 0x836   :  { %4203 = vsyncpa [#allocation4], 1 }

</bundles_post_ra>
